<compile_context>
chip_gen: v5e
topology: v5e:2x2
jax: 0.10.0
libtpu: 0.0.40
codegen_flags: <defaults>
</compile_context>

<pallas_src>
import functools

import jax
import jax.numpy as jnp
from jax import lax
from jax.experimental import pallas as pl
from jax.experimental.pallas import tpu as pltpu


def _ln_relu(x, g, b, eps=1e-5):
    """LayerNorm(mode='node') + ReLU, one-pass statistics, all f32.

    Note: one-pass variance (E[x^2] - E[x]^2) can cancel when |mean| >> std;
    the maximum(., 0) clamp guards against negative variance / NaN.  At these
    activation magnitudes this is numerically fine.
    """
    inv_c = 1.0 / x.shape[-1]
    s1 = jnp.sum(x, axis=-1, keepdims=True)
    s2 = jnp.sum(x * x, axis=-1, keepdims=True)
    mean = s1 * inv_c
    var = jnp.maximum(s2 * inv_c - mean * mean, 0.0)
    y = (x - mean) * lax.rsqrt(var + eps) * g + b
    return jnp.maximum(y, 0.0)


def idgnn_fused_kernel(
    # node inputs
    feat_u_ref, feat_i_ref, rel_u_ref, rel_i_ref, n_seed_ref, adj_ref,
    # fused encoder (tabular + temporal) params, id-awareness, PE constants
    w_enc_u_ref, b_enc_u_ref, w_enc_i_ref, b_enc_i_ref, id_emb_ref,
    div_ref, phase_ref,
    # stacked per-layer fused GNN params (leading dim = num_layers)
    w_ui_ref, b_ui_ref, w_iu_ref, b_iu_ref,
    g_u_ref, bb_u_ref, g_i_ref, bb_i_ref,
    # head params (output dim padded to a lane-dense 128)
    w_head_ref, b_head_ref,
    # output
    o_ref,
    *, num_layers):
    f32 = jnp.float32
    bf16 = jnp.bfloat16

    # ---- hoisted (1, C) broadcast operands used by both node types --------
    div = div_ref[...]
    phase = phase_ref[...]

    def encode(feat_pad, w_fused, b_fused, rel):
        # Fused [tabular Linear ; temporal Linear]: one 256-deep bf16 matmul.
        # Interleaved sin/cos PE done as one sin with per-lane phase shift
        # (sin(arg + pi/2) == cos(arg)) -> half the EUP transcendental pushes.
        pe = jnp.sin(rel * div + phase)                       # (N, C) f32
        h = jnp.concatenate([feat_pad, pe], axis=-1)          # (N, 2C) f32
        return jnp.dot(h.astype(bf16), w_fused,
                       preferred_element_type=f32) + b_fused

    # ---- fused encoder + temporal encoder + id-awareness ------------------
    x_u = encode(feat_u_ref[...], w_enc_u_ref[...], b_enc_u_ref[...],
                 rel_u_ref[...])
    nu = x_u.shape[0]
    seed_mask = (lax.broadcasted_iota(jnp.int32, (nu, 1), 0)
                 < n_seed_ref[0]).astype(f32)                 # first n_seed rows
    x_u = x_u + seed_mask * id_emb_ref[...]
    x_i = encode(feat_i_ref[...], w_enc_i_ref[...], b_enc_i_ref[...],
                 rel_i_ref[...])

    # ---- adjacency stays bf16 (native MXU dtype); no f32 copy, no .T ------
    adj = adj_ref[...]                                        # (NI, NU) bf16

    # ---- HeteroGraphSAGE layers (activations stay VMEM/vreg resident) -----
    # TODO(synk): switch to lax.fori_loop with dynamic ref[layer] indexing if
    #             num_layers grows beyond ~4 (live-range / code-size control).
    for layer in range(num_layers):
        # SAGEConv (aggr='sum'): lin_l(sum_{j in N(i)} x_j) + bias + lin_r(x_i)
        agg_i = jnp.dot(adj, x_u.astype(bf16),
                        preferred_element_type=f32)           # user -> item
        # reverse edge type: trans-A contraction, no transposed copy in VMEM
        agg_u = lax.dot_general(adj, x_i.astype(bf16),
                                dimension_numbers=(((0,), (0,)), ((), ())),
                                preferred_element_type=f32)   # item -> user
        # fused lin_l + lin_r: one 256-deep matmul per direction
        h_i = jnp.concatenate([agg_i, x_i], axis=-1).astype(bf16)   # (NI, 2C)
        h_u = jnp.concatenate([agg_u, x_u], axis=-1).astype(bf16)   # (NU, 2C)
        out_i = jnp.dot(h_i, w_ui_ref[layer],
                        preferred_element_type=f32) + b_ui_ref[layer]
        out_u = jnp.dot(h_u, w_iu_ref[layer],
                        preferred_element_type=f32) + b_iu_ref[layer]
        x_i = _ln_relu(out_i, g_i_ref[layer], bb_i_ref[layer])
        x_u = _ln_relu(out_u, g_u_ref[layer], bb_u_ref[layer])

    # ---- head (MLP num_layers=1 == Linear), lane-dense (NI, 128) store ----
    o_ref[...] = (jnp.dot(x_i.astype(bf16), w_head_ref[...],
                          preferred_element_type=f32) + b_head_ref[...])


def idgnn_forward(batch, params, num_layers, out_channels):
    ni = batch["feat_item"].shape[0]
    nu = batch["feat_user"].shape[0]
    c = params["id_emb"].shape[1]
    out_pad = params["w_head"].shape[1]

    args = (
        batch["feat_user"], batch["feat_item"],
        batch["rel_time_u"], batch["rel_time_i"],
        batch["n_seed"], batch["adj_u2i"],
        params["w_enc_u"], params["b_enc_u"],
        params["w_enc_i"], params["b_enc_i"], params["id_emb"],
        params["div"], params["phase"],
        params["w_ui"], params["b_ui"], params["w_iu"], params["b_iu"],
        params["ln_g_u"], params["ln_b_u"], params["ln_g_i"], params["ln_b_i"],
        params["w_head"], params["b_head"],
    )

    vmem = pl.BlockSpec(memory_space=pltpu.MemorySpace.VMEM)
    smem = pl.BlockSpec(memory_space=pltpu.MemorySpace.SMEM)
    # arg index 4 is the n_seed scalar -> SMEM; everything else -> VMEM
    in_specs = [vmem, vmem, vmem, vmem, smem] + [vmem] * (len(args) - 5)

    # Advisory cost estimate (encoder + L layers of aggregation/update + head)
    flops = (2 * (nu + ni) * (2 * c) * c
             + num_layers * (2 * 2 * ni * nu * c
                             + 2 * (nu + ni) * (2 * c) * c)
             + 2 * ni * c * out_pad)
    transcendentals = (nu + ni) * c + num_layers * (nu + ni)
    bytes_accessed = int(sum(a.size * a.dtype.itemsize for a in args)
                         + ni * out_pad * 4)

    out_full = pl.pallas_call(
        functools.partial(idgnn_fused_kernel, num_layers=num_layers),
        out_shape=jax.ShapeDtypeStruct((ni, out_pad), jnp.float32),
        in_specs=in_specs,
        out_specs=vmem,
        compiler_params=pltpu.CompilerParams(
            vmem_limit_bytes=32 * 1024 * 1024),
        cost_estimate=pl.CostEstimate(
            flops=int(flops), transcendentals=int(transcendentals),
            bytes_accessed=bytes_accessed),
    )(*args)
    # slice the logical head width out of the lane-dense padded output
    return out_full[:, :out_channels]


# ----------------------------------------------------------------------------
# Deterministic parameter / input construction
# ----------------------------------------------------------------------------
def build_everything(key, *, nu, ni, fu, fi, c, out_c, out_pad, n_seed,
                     n_edges, num_layers, fpad=128):
    keys = iter(jax.random.split(key, 64))
    bf16, f32 = jnp.bfloat16, jnp.float32

    def nrm(shape, scale=0.1):
        return scale * jax.random.normal(next(keys), shape, dtype=f32)

    params = {}

    # Fused encoder weight per node type: rows [0:fpad] = tabular Linear
    # (zero-padded feature columns -> zero rows), rows [fpad:fpad+c] = temporal
    # Linear.  Stored bf16 (MXU operand); combined bias stays f32.
    def enc_fused(f_raw):
        w_enc = jnp.zeros((fpad, c), f32).at[:f_raw, :].set(nrm((f_raw, c)))
        w_t = nrm((c, c))
        w = jnp.concatenate([w_enc, w_t], axis=0).astype(bf16)   # (fpad+c, c)
        b = (nrm((1, c)) + nrm((1, c))).astype(f32)               # b_enc + b_t
        return w, b

    params["w_enc_u"], params["b_enc_u"] = enc_fused(fu)
    params["w_enc_i"], params["b_enc_i"] = enc_fused(fi)
    params["id_emb"] = nrm((1, c))

    # head Linear padded to a lane-dense (c, out_pad); columns >= out_c are 0,
    # so slicing the padded output reproduces the plain (c, out_c) Linear.
    params["w_head"] = (jnp.zeros((c, out_pad), f32)
                        .at[:, :out_c].set(nrm((c, out_c)))).astype(bf16)
    params["b_head"] = (jnp.zeros((1, out_pad), f32)
                        .at[:, :out_c].set(nrm((1, out_c))))

    # Per-layer fused SAGEConv weights: [lin_l ; lin_r] stacked along the
    # contraction dim -> (2c, c), stacked over layers, stored bf16.
    def stack_fused():
        return jnp.stack(
            [jnp.concatenate([nrm((c, c)), nrm((c, c))], axis=0)
             for _ in range(num_layers)], axis=0).astype(bf16)

    def stack_bias():
        return jnp.stack([nrm((1, c)) for _ in range(num_layers)], axis=0)

    params["w_ui"] = stack_fused()   # user->item direction (updates items)
    params["b_ui"] = stack_bias()
    params["w_iu"] = stack_fused()   # item->user (reverse) direction
    params["b_iu"] = stack_bias()
    params["ln_g_u"] = jnp.ones((num_layers, 1, c), f32)
    params["ln_b_u"] = jnp.zeros((num_layers, 1, c), f32)
    params["ln_g_i"] = jnp.ones((num_layers, 1, c), f32)
    params["ln_b_i"] = jnp.zeros((num_layers, 1, c), f32)

    # PE constants: div[j] = exp(-(2*(j//2)) ln(1e4)/C); phase folds the cos
    # branch into a single sin (odd lanes get +pi/2).
    j = jnp.arange(c)
    params["div"] = (jnp.exp(-(2.0 * (j // 2)) * jnp.log(10000.0) / c)
                     .reshape(1, c).astype(f32))
    params["phase"] = ((j % 2 == 1).astype(f32) * (jnp.pi / 2.0)).reshape(1, c)

    # --- synthetic hetero batch ---------------------------------------------
    # raw tabular features zero-padded to 128 lanes (lane-dense, enables the
    # fused 256-deep encoder contraction)
    feat_user = (jnp.zeros((nu, fpad), f32)
                 .at[:, :fu].set(jax.random.normal(next(keys), (nu, fu), f32)))
    feat_item = (jnp.zeros((ni, fpad), f32)
                 .at[:, :fi].set(jax.random.normal(next(keys), (ni, fi), f32)))

    # dense adjacency user -> item, stored bf16 (small integer edge counts are
    # exact in bf16).  The reverse edge type is handled in-kernel by a trans-A
    # contraction; no second adjacency / transpose is materialized.
    src = jax.random.randint(next(keys), (n_edges,), 0, nu)
    dst = jax.random.randint(next(keys), (n_edges,), 0, ni)
    adj_u2i = (jnp.zeros((ni, nu), f32).at[dst, src].add(1.0)).astype(bf16)

    # timestamps (seconds) and seed assignment for the temporal encoder
    seed_time = 1e6 + 1e5 * jax.random.uniform(next(keys), (n_seed,))
    batch_u = jax.random.randint(next(keys), (nu,), 0, n_seed)
    batch_i = jax.random.randint(next(keys), (ni,), 0, n_seed)
    time_u = 1e5 * jax.random.uniform(next(keys), (nu,))
    time_i = 1e5 * jax.random.uniform(next(keys), (ni,))
    day = 60.0 * 60.0 * 24.0
    rel_time_u = ((seed_time[batch_u] - time_u) / day).reshape(nu, 1)
    rel_time_i = ((seed_time[batch_i] - time_i) / day).reshape(ni, 1)

    batch = {
        "feat_user": feat_user, "feat_item": feat_item,
        "adj_u2i": adj_u2i,
        "rel_time_u": rel_time_u.astype(f32),
        "rel_time_i": rel_time_i.astype(f32),
        "n_seed": jnp.array([n_seed], dtype=jnp.int32),
    }
    return batch, params


if __name__ == "__main__":
    NUM_LAYERS = 2
    CHANNELS = 128        # lane-dense feature width (multiple of 128)
    OUT_CHANNELS = 8      # logical head width
    OUT_PAD = 128         # head output padded to full lane width in-kernel
    NU, NI = 16, 24       # users (entity_table), items (dst_table)
    FU, FI = 16, 24       # raw tabular feature dims (zero-padded to 128)
    N_SEED = 4
    N_EDGES = 64

    batch, params = build_everything(
        jax.random.PRNGKey(0),
        nu=NU, ni=NI, fu=FU, fi=FI, c=CHANNELS, out_c=OUT_CHANNELS,
        out_pad=OUT_PAD, n_seed=N_SEED, n_edges=N_EDGES,
        num_layers=NUM_LAYERS)

    out = idgnn_forward(batch, params, NUM_LAYERS, OUT_CHANNELS)
    out = jax.block_until_ready(out)
    assert out.shape == (NI, OUT_CHANNELS), out.shape
    assert out.dtype == jnp.float32
    assert bool(jnp.all(jnp.isfinite(out)))
    print("KERNEL_OK")
</pallas_src>

<mosaic_0001>
module attributes {stable_mosaic.version = 11 : i64} {
  func.func @idgnn_fused_kernel(%arg0: memref<16x128xf32, #tpu.memory_space<vmem>>, %arg1: memref<24x128xf32, #tpu.memory_space<vmem>>, %arg2: memref<16x1xf32, #tpu.memory_space<vmem>>, %arg3: memref<24x1xf32, #tpu.memory_space<vmem>>, %arg4: memref<1xi32, #tpu.memory_space<smem>>, %arg5: memref<24x16xbf16, #tpu.memory_space<vmem>>, %arg6: memref<256x128xbf16, #tpu.memory_space<vmem>>, %arg7: memref<1x128xf32, #tpu.memory_space<vmem>>, %arg8: memref<256x128xbf16, #tpu.memory_space<vmem>>, %arg9: memref<1x128xf32, #tpu.memory_space<vmem>>, %arg10: memref<1x128xf32, #tpu.memory_space<vmem>>, %arg11: memref<1x128xf32, #tpu.memory_space<vmem>>, %arg12: memref<1x128xf32, #tpu.memory_space<vmem>>, %arg13: memref<2x256x128xbf16, #tpu.memory_space<vmem>>, %arg14: memref<2x1x128xf32, #tpu.memory_space<vmem>>, %arg15: memref<2x256x128xbf16, #tpu.memory_space<vmem>>, %arg16: memref<2x1x128xf32, #tpu.memory_space<vmem>>, %arg17: memref<2x1x128xf32, #tpu.memory_space<vmem>>, %arg18: memref<2x1x128xf32, #tpu.memory_space<vmem>>, %arg19: memref<2x1x128xf32, #tpu.memory_space<vmem>>, %arg20: memref<2x1x128xf32, #tpu.memory_space<vmem>>, %arg21: memref<128x128xbf16, #tpu.memory_space<vmem>>, %arg22: memref<1x128xf32, #tpu.memory_space<vmem>>, %arg23: memref<24x128xf32, #tpu.memory_space<vmem>>) attributes {dimension_semantics = [], scalar_prefetch = 0 : i64, scratch_operands = 0 : i64, tpu.core_type = #tpu.core_type<tc>} {
    %c0 = arith.constant 0 : index
    %c0_0 = arith.constant 0 : index
    %0 = vector.load %arg11[%c0, %c0_0] : memref<1x128xf32, #tpu.memory_space<vmem>>, vector<1x128xf32>
    %c0_1 = arith.constant 0 : index
    %c0_2 = arith.constant 0 : index
    %1 = vector.load %arg12[%c0_1, %c0_2] : memref<1x128xf32, #tpu.memory_space<vmem>>, vector<1x128xf32>
    %c0_3 = arith.constant 0 : index
    %c0_4 = arith.constant 0 : index
    %2 = vector.load %arg0[%c0_3, %c0_4] : memref<16x128xf32, #tpu.memory_space<vmem>>, vector<16x128xf32>
    %c0_5 = arith.constant 0 : index
    %c0_6 = arith.constant 0 : index
    %3 = vector.load %arg6[%c0_5, %c0_6] : memref<256x128xbf16, #tpu.memory_space<vmem>>, vector<256x128xbf16>
    %c0_7 = arith.constant 0 : index
    %c0_8 = arith.constant 0 : index
    %4 = vector.load %arg7[%c0_7, %c0_8] : memref<1x128xf32, #tpu.memory_space<vmem>>, vector<1x128xf32>
    %c0_9 = arith.constant 0 : index
    %c0_10 = arith.constant 0 : index
    %5 = vector.load %arg2[%c0_9, %c0_10] : memref<16x1xf32, #tpu.memory_space<vmem>>, vector<16x1xf32>
    %6 = vector.broadcast %5 : vector<16x1xf32> to vector<16x128xf32>
    %7 = vector.broadcast %0 : vector<1x128xf32> to vector<16x128xf32>
    %8 = arith.mulf %6, %7 : vector<16x128xf32>
    %9 = vector.broadcast %1 : vector<1x128xf32> to vector<16x128xf32>
    %10 = arith.addf %8, %9 : vector<16x128xf32>
    %11 = math.sin %10 : vector<16x128xf32>
    %12 = tpu.concatenate %2, %11 in 1 : vector<16x128xf32>, vector<16x128xf32> -> vector<16x256xf32>
    %13 = arith.truncf %12 : vector<16x256xf32> to vector<16x256xbf16>
    %cst = arith.constant dense<0.000000e+00> : vector<16x128xf32>
    %14 = tpu.matmul %13, %3, %cst {dimension_numbers = #tpu.dot_dimension_numbers<[1], [0], [0], [1], [0, 0, 1, 1], [], []>} : vector<16x256xbf16>, vector<256x128xbf16>, vector<16x128xf32> -> vector<16x128xf32>
    %15 = vector.broadcast %4 : vector<1x128xf32> to vector<16x128xf32>
    %16 = arith.addf %14, %15 : vector<16x128xf32>
    %17 = tpu.iota {dimensions = array<i32: 0>} : vector<16x1xi32>
    %c0_11 = arith.constant 0 : index
    %18 = memref.load %arg4[%c0_11] : memref<1xi32, #tpu.memory_space<smem>>
    %19 = vector.broadcast %18 : i32 to vector<16x1xi32>
    %20 = arith.cmpi slt, %17, %19 : vector<16x1xi32>
    %21 = arith.extui %20 : vector<16x1xi1> to vector<16x1xi32>
    %22 = arith.sitofp %21 : vector<16x1xi32> to vector<16x1xf32>
    %c0_12 = arith.constant 0 : index
    %c0_13 = arith.constant 0 : index
    %23 = vector.load %arg10[%c0_12, %c0_13] : memref<1x128xf32, #tpu.memory_space<vmem>>, vector<1x128xf32>
    %24 = vector.broadcast %22 : vector<16x1xf32> to vector<16x128xf32>
    %25 = vector.broadcast %23 : vector<1x128xf32> to vector<16x128xf32>
    %26 = arith.mulf %24, %25 : vector<16x128xf32>
    %27 = arith.addf %16, %26 : vector<16x128xf32>
    %c0_14 = arith.constant 0 : index
    %c0_15 = arith.constant 0 : index
    %28 = vector.load %arg1[%c0_14, %c0_15] : memref<24x128xf32, #tpu.memory_space<vmem>>, vector<24x128xf32>
    %c0_16 = arith.constant 0 : index
    %c0_17 = arith.constant 0 : index
    %29 = vector.load %arg8[%c0_16, %c0_17] : memref<256x128xbf16, #tpu.memory_space<vmem>>, vector<256x128xbf16>
    %c0_18 = arith.constant 0 : index
    %c0_19 = arith.constant 0 : index
    %30 = vector.load %arg9[%c0_18, %c0_19] : memref<1x128xf32, #tpu.memory_space<vmem>>, vector<1x128xf32>
    %c0_20 = arith.constant 0 : index
    %c0_21 = arith.constant 0 : index
    %31 = vector.load %arg3[%c0_20, %c0_21] : memref<24x1xf32, #tpu.memory_space<vmem>>, vector<24x1xf32>
    %32 = vector.broadcast %31 : vector<24x1xf32> to vector<24x128xf32>
    %33 = vector.broadcast %0 : vector<1x128xf32> to vector<24x128xf32>
    %34 = arith.mulf %32, %33 : vector<24x128xf32>
    %35 = vector.broadcast %1 : vector<1x128xf32> to vector<24x128xf32>
    %36 = arith.addf %34, %35 : vector<24x128xf32>
    %37 = math.sin %36 : vector<24x128xf32>
    %38 = tpu.concatenate %28, %37 in 1 : vector<24x128xf32>, vector<24x128xf32> -> vector<24x256xf32>
    %39 = arith.truncf %38 : vector<24x256xf32> to vector<24x256xbf16>
    %cst_22 = arith.constant dense<0.000000e+00> : vector<24x128xf32>
    %40 = tpu.matmul %39, %29, %cst_22 {dimension_numbers = #tpu.dot_dimension_numbers<[1], [0], [0], [1], [0, 0, 1, 1], [], []>} : vector<24x256xbf16>, vector<256x128xbf16>, vector<24x128xf32> -> vector<24x128xf32>
    %41 = vector.broadcast %30 : vector<1x128xf32> to vector<24x128xf32>
    %42 = arith.addf %40, %41 : vector<24x128xf32>
    %c0_23 = arith.constant 0 : index
    %c0_24 = arith.constant 0 : index
    %43 = vector.load %arg5[%c0_23, %c0_24] : memref<24x16xbf16, #tpu.memory_space<vmem>>, vector<24x16xbf16>
    %44 = arith.truncf %27 : vector<16x128xf32> to vector<16x128xbf16>
    %cst_25 = arith.constant dense<0.000000e+00> : vector<24x128xf32>
    %45 = tpu.matmul %43, %44, %cst_25 {dimension_numbers = #tpu.dot_dimension_numbers<[1], [0], [0], [1], [0, 0, 1, 1], [], []>} : vector<24x16xbf16>, vector<16x128xbf16>, vector<24x128xf32> -> vector<24x128xf32>
    %46 = arith.truncf %42 : vector<24x128xf32> to vector<24x128xbf16>
    %cst_26 = arith.constant dense<0.000000e+00> : vector<16x128xf32>
    %47 = tpu.matmul %43, %46, %cst_26 {dimension_numbers = #tpu.dot_dimension_numbers<[0], [0], [1], [1], [0, 1, 1, 1], [], []>} : vector<24x16xbf16>, vector<24x128xbf16>, vector<16x128xf32> -> vector<16x128xf32>
    %48 = tpu.concatenate %45, %42 in 1 : vector<24x128xf32>, vector<24x128xf32> -> vector<24x256xf32>
    %49 = arith.truncf %48 : vector<24x256xf32> to vector<24x256xbf16>
    %50 = tpu.concatenate %47, %27 in 1 : vector<16x128xf32>, vector<16x128xf32> -> vector<16x256xf32>
    %51 = arith.truncf %50 : vector<16x256xf32> to vector<16x256xbf16>
    %c0_27 = arith.constant 0 : index
    %c0_28 = arith.constant 0 : index
    %c0_29 = arith.constant 0 : index
    %52 = vector.load %arg13[%c0_27, %c0_28, %c0_29] : memref<2x256x128xbf16, #tpu.memory_space<vmem>>, vector<1x256x128xbf16>
    %53 = vector.shape_cast %52 : vector<1x256x128xbf16> to vector<256x128xbf16>
    %cst_30 = arith.constant dense<0.000000e+00> : vector<24x128xf32>
    %54 = tpu.matmul %49, %53, %cst_30 {dimension_numbers = #tpu.dot_dimension_numbers<[1], [0], [0], [1], [0, 0, 1, 1], [], []>} : vector<24x256xbf16>, vector<256x128xbf16>, vector<24x128xf32> -> vector<24x128xf32>
    %c0_31 = arith.constant 0 : index
    %c0_32 = arith.constant 0 : index
    %c0_33 = arith.constant 0 : index
    %55 = vector.load %arg14[%c0_31, %c0_32, %c0_33] : memref<2x1x128xf32, #tpu.memory_space<vmem>>, vector<1x1x128xf32>
    %56 = vector.shape_cast %55 : vector<1x1x128xf32> to vector<1x128xf32>
    %57 = vector.broadcast %56 : vector<1x128xf32> to vector<24x128xf32>
    %58 = arith.addf %54, %57 : vector<24x128xf32>
    %c0_34 = arith.constant 0 : index
    %c0_35 = arith.constant 0 : index
    %c0_36 = arith.constant 0 : index
    %59 = vector.load %arg15[%c0_34, %c0_35, %c0_36] : memref<2x256x128xbf16, #tpu.memory_space<vmem>>, vector<1x256x128xbf16>
    %60 = vector.shape_cast %59 : vector<1x256x128xbf16> to vector<256x128xbf16>
    %cst_37 = arith.constant dense<0.000000e+00> : vector<16x128xf32>
    %61 = tpu.matmul %51, %60, %cst_37 {dimension_numbers = #tpu.dot_dimension_numbers<[1], [0], [0], [1], [0, 0, 1, 1], [], []>} : vector<16x256xbf16>, vector<256x128xbf16>, vector<16x128xf32> -> vector<16x128xf32>
    %c0_38 = arith.constant 0 : index
    %c0_39 = arith.constant 0 : index
    %c0_40 = arith.constant 0 : index
    %62 = vector.load %arg16[%c0_38, %c0_39, %c0_40] : memref<2x1x128xf32, #tpu.memory_space<vmem>>, vector<1x1x128xf32>
    %63 = vector.shape_cast %62 : vector<1x1x128xf32> to vector<1x128xf32>
    %64 = vector.broadcast %63 : vector<1x128xf32> to vector<16x128xf32>
    %65 = arith.addf %61, %64 : vector<16x128xf32>
    %c0_41 = arith.constant 0 : index
    %c0_42 = arith.constant 0 : index
    %c0_43 = arith.constant 0 : index
    %66 = vector.load %arg19[%c0_41, %c0_42, %c0_43] : memref<2x1x128xf32, #tpu.memory_space<vmem>>, vector<1x1x128xf32>
    %67 = vector.shape_cast %66 : vector<1x1x128xf32> to vector<1x128xf32>
    %c0_44 = arith.constant 0 : index
    %c0_45 = arith.constant 0 : index
    %c0_46 = arith.constant 0 : index
    %68 = vector.load %arg20[%c0_44, %c0_45, %c0_46] : memref<2x1x128xf32, #tpu.memory_space<vmem>>, vector<1x1x128xf32>
    %69 = vector.shape_cast %68 : vector<1x1x128xf32> to vector<1x128xf32>
    %cst_47 = arith.constant dense<0.000000e+00> : vector<24xf32>
    %70 = vector.multi_reduction <add>, %58, %cst_47 [1] : vector<24x128xf32> to vector<24xf32>
    %71 = vector.shape_cast %70 : vector<24xf32> to vector<24x1xf32>
    %72 = arith.mulf %58, %58 : vector<24x128xf32>
    %cst_48 = arith.constant dense<0.000000e+00> : vector<24xf32>
    %73 = vector.multi_reduction <add>, %72, %cst_48 [1] : vector<24x128xf32> to vector<24xf32>
    %74 = vector.shape_cast %73 : vector<24xf32> to vector<24x1xf32>
    %cst_49 = arith.constant 7.812500e-03 : f32
    %75 = vector.broadcast %cst_49 : f32 to vector<24x1xf32>
    %76 = arith.mulf %71, %75 : vector<24x1xf32>
    %cst_50 = arith.constant 7.812500e-03 : f32
    %77 = vector.broadcast %cst_50 : f32 to vector<24x1xf32>
    %78 = arith.mulf %74, %77 : vector<24x1xf32>
    %79 = arith.mulf %76, %76 : vector<24x1xf32>
    %80 = arith.subf %78, %79 : vector<24x1xf32>
    %cst_51 = arith.constant 0.000000e+00 : f32
    %81 = vector.broadcast %cst_51 : f32 to vector<24x1xf32>
    %82 = arith.maximumf %80, %81 : vector<24x1xf32>
    %83 = vector.broadcast %76 : vector<24x1xf32> to vector<24x128xf32>
    %84 = arith.subf %58, %83 : vector<24x128xf32>
    %cst_52 = arith.constant 9.99999974E-6 : f32
    %85 = vector.broadcast %cst_52 : f32 to vector<24x1xf32>
    %86 = arith.addf %82, %85 : vector<24x1xf32>
    %87 = math.rsqrt %86 : vector<24x1xf32>
    %88 = vector.broadcast %87 : vector<24x1xf32> to vector<24x128xf32>
    %89 = arith.mulf %84, %88 : vector<24x128xf32>
    %90 = vector.broadcast %67 : vector<1x128xf32> to vector<24x128xf32>
    %91 = arith.mulf %89, %90 : vector<24x128xf32>
    %92 = vector.broadcast %69 : vector<1x128xf32> to vector<24x128xf32>
    %93 = arith.addf %91, %92 : vector<24x128xf32>
    %cst_53 = arith.constant 0.000000e+00 : f32
    %94 = vector.broadcast %cst_53 : f32 to vector<24x128xf32>
    %95 = arith.maximumf %93, %94 : vector<24x128xf32>
    %c0_54 = arith.constant 0 : index
    %c0_55 = arith.constant 0 : index
    %c0_56 = arith.constant 0 : index
    %96 = vector.load %arg17[%c0_54, %c0_55, %c0_56] : memref<2x1x128xf32, #tpu.memory_space<vmem>>, vector<1x1x128xf32>
    %97 = vector.shape_cast %96 : vector<1x1x128xf32> to vector<1x128xf32>
    %c0_57 = arith.constant 0 : index
    %c0_58 = arith.constant 0 : index
    %c0_59 = arith.constant 0 : index
    %98 = vector.load %arg18[%c0_57, %c0_58, %c0_59] : memref<2x1x128xf32, #tpu.memory_space<vmem>>, vector<1x1x128xf32>
    %99 = vector.shape_cast %98 : vector<1x1x128xf32> to vector<1x128xf32>
    %cst_60 = arith.constant dense<0.000000e+00> : vector<16xf32>
    %100 = vector.multi_reduction <add>, %65, %cst_60 [1] : vector<16x128xf32> to vector<16xf32>
    %101 = vector.shape_cast %100 : vector<16xf32> to vector<16x1xf32>
    %102 = arith.mulf %65, %65 : vector<16x128xf32>
    %cst_61 = arith.constant dense<0.000000e+00> : vector<16xf32>
    %103 = vector.multi_reduction <add>, %102, %cst_61 [1] : vector<16x128xf32> to vector<16xf32>
    %104 = vector.shape_cast %103 : vector<16xf32> to vector<16x1xf32>
    %cst_62 = arith.constant 7.812500e-03 : f32
    %105 = vector.broadcast %cst_62 : f32 to vector<16x1xf32>
    %106 = arith.mulf %101, %105 : vector<16x1xf32>
    %cst_63 = arith.constant 7.812500e-03 : f32
    %107 = vector.broadcast %cst_63 : f32 to vector<16x1xf32>
    %108 = arith.mulf %104, %107 : vector<16x1xf32>
    %109 = arith.mulf %106, %106 : vector<16x1xf32>
    %110 = arith.subf %108, %109 : vector<16x1xf32>
    %cst_64 = arith.constant 0.000000e+00 : f32
    %111 = vector.broadcast %cst_64 : f32 to vector<16x1xf32>
    %112 = arith.maximumf %110, %111 : vector<16x1xf32>
    %113 = vector.broadcast %106 : vector<16x1xf32> to vector<16x128xf32>
    %114 = arith.subf %65, %113 : vector<16x128xf32>
    %cst_65 = arith.constant 9.99999974E-6 : f32
    %115 = vector.broadcast %cst_65 : f32 to vector<16x1xf32>
    %116 = arith.addf %112, %115 : vector<16x1xf32>
    %117 = math.rsqrt %116 : vector<16x1xf32>
    %118 = vector.broadcast %117 : vector<16x1xf32> to vector<16x128xf32>
    %119 = arith.mulf %114, %118 : vector<16x128xf32>
    %120 = vector.broadcast %97 : vector<1x128xf32> to vector<16x128xf32>
    %121 = arith.mulf %119, %120 : vector<16x128xf32>
    %122 = vector.broadcast %99 : vector<1x128xf32> to vector<16x128xf32>
    %123 = arith.addf %121, %122 : vector<16x128xf32>
    %cst_66 = arith.constant 0.000000e+00 : f32
    %124 = vector.broadcast %cst_66 : f32 to vector<16x128xf32>
    %125 = arith.maximumf %123, %124 : vector<16x128xf32>
    %126 = arith.truncf %125 : vector<16x128xf32> to vector<16x128xbf16>
    %cst_67 = arith.constant dense<0.000000e+00> : vector<24x128xf32>
    %127 = tpu.matmul %43, %126, %cst_67 {dimension_numbers = #tpu.dot_dimension_numbers<[1], [0], [0], [1], [0, 0, 1, 1], [], []>} : vector<24x16xbf16>, vector<16x128xbf16>, vector<24x128xf32> -> vector<24x128xf32>
    %128 = tpu.concatenate %127, %95 in 1 : vector<24x128xf32>, vector<24x128xf32> -> vector<24x256xf32>
    %129 = arith.truncf %128 : vector<24x256xf32> to vector<24x256xbf16>
    %c1 = arith.constant 1 : index
    %c0_68 = arith.constant 0 : index
    %c0_69 = arith.constant 0 : index
    %130 = vector.load %arg13[%c1, %c0_68, %c0_69] : memref<2x256x128xbf16, #tpu.memory_space<vmem>>, vector<1x256x128xbf16>
    %131 = vector.shape_cast %130 : vector<1x256x128xbf16> to vector<256x128xbf16>
    %cst_70 = arith.constant dense<0.000000e+00> : vector<24x128xf32>
    %132 = tpu.matmul %129, %131, %cst_70 {dimension_numbers = #tpu.dot_dimension_numbers<[1], [0], [0], [1], [0, 0, 1, 1], [], []>} : vector<24x256xbf16>, vector<256x128xbf16>, vector<24x128xf32> -> vector<24x128xf32>
    %c1_71 = arith.constant 1 : index
    %c0_72 = arith.constant 0 : index
    %c0_73 = arith.constant 0 : index
    %133 = vector.load %arg14[%c1_71, %c0_72, %c0_73] : memref<2x1x128xf32, #tpu.memory_space<vmem>>, vector<1x1x128xf32>
    %134 = vector.shape_cast %133 : vector<1x1x128xf32> to vector<1x128xf32>
    %135 = vector.broadcast %134 : vector<1x128xf32> to vector<24x128xf32>
    %136 = arith.addf %132, %135 : vector<24x128xf32>
    %c1_74 = arith.constant 1 : index
    %c0_75 = arith.constant 0 : index
    %c0_76 = arith.constant 0 : index
    %137 = vector.load %arg19[%c1_74, %c0_75, %c0_76] : memref<2x1x128xf32, #tpu.memory_space<vmem>>, vector<1x1x128xf32>
    %138 = vector.shape_cast %137 : vector<1x1x128xf32> to vector<1x128xf32>
    %c1_77 = arith.constant 1 : index
    %c0_78 = arith.constant 0 : index
    %c0_79 = arith.constant 0 : index
    %139 = vector.load %arg20[%c1_77, %c0_78, %c0_79] : memref<2x1x128xf32, #tpu.memory_space<vmem>>, vector<1x1x128xf32>
    %140 = vector.shape_cast %139 : vector<1x1x128xf32> to vector<1x128xf32>
    %cst_80 = arith.constant dense<0.000000e+00> : vector<24xf32>
    %141 = vector.multi_reduction <add>, %136, %cst_80 [1] : vector<24x128xf32> to vector<24xf32>
    %142 = vector.shape_cast %141 : vector<24xf32> to vector<24x1xf32>
    %143 = arith.mulf %136, %136 : vector<24x128xf32>
    %cst_81 = arith.constant dense<0.000000e+00> : vector<24xf32>
    %144 = vector.multi_reduction <add>, %143, %cst_81 [1] : vector<24x128xf32> to vector<24xf32>
    %145 = vector.shape_cast %144 : vector<24xf32> to vector<24x1xf32>
    %cst_82 = arith.constant 7.812500e-03 : f32
    %146 = vector.broadcast %cst_82 : f32 to vector<24x1xf32>
    %147 = arith.mulf %142, %146 : vector<24x1xf32>
    %cst_83 = arith.constant 7.812500e-03 : f32
    %148 = vector.broadcast %cst_83 : f32 to vector<24x1xf32>
    %149 = arith.mulf %145, %148 : vector<24x1xf32>
    %150 = arith.mulf %147, %147 : vector<24x1xf32>
    %151 = arith.subf %149, %150 : vector<24x1xf32>
    %cst_84 = arith.constant 0.000000e+00 : f32
    %152 = vector.broadcast %cst_84 : f32 to vector<24x1xf32>
    %153 = arith.maximumf %151, %152 : vector<24x1xf32>
    %154 = vector.broadcast %147 : vector<24x1xf32> to vector<24x128xf32>
    %155 = arith.subf %136, %154 : vector<24x128xf32>
    %cst_85 = arith.constant 9.99999974E-6 : f32
    %156 = vector.broadcast %cst_85 : f32 to vector<24x1xf32>
    %157 = arith.addf %153, %156 : vector<24x1xf32>
    %158 = math.rsqrt %157 : vector<24x1xf32>
    %159 = vector.broadcast %158 : vector<24x1xf32> to vector<24x128xf32>
    %160 = arith.mulf %155, %159 : vector<24x128xf32>
    %161 = vector.broadcast %138 : vector<1x128xf32> to vector<24x128xf32>
    %162 = arith.mulf %160, %161 : vector<24x128xf32>
    %163 = vector.broadcast %140 : vector<1x128xf32> to vector<24x128xf32>
    %164 = arith.addf %162, %163 : vector<24x128xf32>
    %cst_86 = arith.constant 0.000000e+00 : f32
    %165 = vector.broadcast %cst_86 : f32 to vector<24x128xf32>
    %166 = arith.maximumf %164, %165 : vector<24x128xf32>
    %167 = arith.truncf %166 : vector<24x128xf32> to vector<24x128xbf16>
    %c0_87 = arith.constant 0 : index
    %c0_88 = arith.constant 0 : index
    %168 = vector.load %arg21[%c0_87, %c0_88] : memref<128x128xbf16, #tpu.memory_space<vmem>>, vector<128x128xbf16>
    %cst_89 = arith.constant dense<0.000000e+00> : vector<24x128xf32>
    %169 = tpu.matmul %167, %168, %cst_89 {dimension_numbers = #tpu.dot_dimension_numbers<[1], [0], [0], [1], [0, 0, 1, 1], [], []>} : vector<24x128xbf16>, vector<128x128xbf16>, vector<24x128xf32> -> vector<24x128xf32>
    %c0_90 = arith.constant 0 : index
    %c0_91 = arith.constant 0 : index
    %170 = vector.load %arg22[%c0_90, %c0_91] : memref<1x128xf32, #tpu.memory_space<vmem>>, vector<1x128xf32>
    %171 = vector.broadcast %170 : vector<1x128xf32> to vector<24x128xf32>
    %172 = arith.addf %169, %171 : vector<24x128xf32>
    %c0_92 = arith.constant 0 : index
    %c0_93 = arith.constant 0 : index
    %173 = vector.load %arg23[%c0_92, %c0_93] : memref<24x128xf32, #tpu.memory_space<vmem>>, vector<24x128xf32>
    tpu.vector_store %arg23[%c0_92, %c0_93], %172 {strides = array<i32>} : memref<24x128xf32, #tpu.memory_space<vmem>>, vector<24x128xf32>,
    return
  }
}

</mosaic_0001>

<bundles_post_ra>
// kernel: tpu_custom_call.1
= control target key start
LH: loop header
LB: loop body
LE: loop exit
PB: predicated region body
PF: predicated region fallthrough
CT: control target
= control target key end

     0   :  { %s4428_s0 = inlined_call_operand.vmem [shape: f32[16,128], index: 0, kind: input, shape index: {}]   ;;  %s4429_s1 = inlined_call_operand.hbm [shape: f32[24,128], index: 1, kind: input, shape index: {}]   ;;  %s4430_s2 = inlined_call_operand.vmem [shape: f32[16,1], index: 2, kind: input, shape index: {}]   ;;  %s4431_s3 = inlined_call_operand.vmem [shape: f32[24,1], index: 3, kind: input, shape index: {}]   ;;  %s4432_s4 = inlined_call_operand.<no memory space> [shape: s32[1], index: 4, kind: input, shape index: {}]   ;;  %s4433_s5 = inlined_call_operand.vmem [shape: bf16[24,16], index: 5, kind: input, shape index: {}]   ;;  %s4434_s6 = inlined_call_operand.hbm [shape: bf16[256,128], index: 6, kind: input, shape index: {}]   ;;  %s4435_s7 = inlined_call_operand.vmem [shape: f32[1,128], index: 7, kind: input, shape index: {}]   ;;  %s4436_s8 = inlined_call_operand.hbm [shape: bf16[256,128], index: 8, kind: input, shape index: {}]   ;;  %s4437_s9 = inlined_call_operand.hbm [shape: f32[1,128], index: 9, kind: input, shape index: {}]   ;;  %s4438_s10 = inlined_call_operand.hbm [shape: f32[1,128], index: 10, kind: input, shape index: {}]   ;;  %s4439_s11 = inlined_call_operand.hbm [shape: f32[1,128], index: 11, kind: input, shape index: {}]   ;;  %s4440_s12 = inlined_call_operand.hbm [shape: f32[1,128], index: 12, kind: input, shape index: {}]   ;;  %s4441_s13 = inlined_call_operand.hbm [shape: bf16[2,256,128], index: 13, kind: input, shape index: {}]   ;;  %s4442_s14 = inlined_call_operand.vmem [shape: f32[2,1,128], index: 14, kind: input, shape index: {}]   ;;  %s4443_s15 = inlined_call_operand.hbm [shape: bf16[2,256,128], index: 15, kind: input, shape index: {}]   ;;  %s4444_s16 = inlined_call_operand.hbm [shape: f32[2,1,128], index: 16, kind: input, shape index: {}]   ;;  %s4445_s17 = inlined_call_operand.hbm [shape: f32[2,1,128], index: 17, kind: input, shape index: {}]   ;;  %s4446_s18 = inlined_call_operand.hbm [shape: f32[2,1,128], index: 18, kind: input, shape index: {}]   ;;  %s4447_s19 = inlined_call_operand.hbm [shape: f32[2,1,128], index: 19, kind: input, shape index: {}]   ;;  %s4448_s20 = inlined_call_operand.hbm [shape: f32[2,1,128], index: 20, kind: input, shape index: {}]   ;;  %s4449_s21 = inlined_call_operand.vmem [shape: bf16[128,128], index: 21, kind: input, shape index: {}]   ;;  %s4450_s22 = inlined_call_operand.vmem [shape: f32[1,128], index: 22, kind: input, shape index: {}]   ;;  %s4451_s23 = inlined_call_operand.hbm [shape: f32[24,128], index: 23, kind: output, shape index: {}]  }
   0x1   :  { %4479 = sst [smem:[#allocation41_spill]] %s4428_s0 }
   0x2   :  { %4480 = sst [smem:[#allocation42_spill]] %s4429_s1 }
   0x3   :  { %4481 = sst [smem:[#allocation43_spill]] %s4430_s2 }
   0x4   :  { %4482 = sst [smem:[#allocation44_spill]] %s4431_s3 }
   0x5   :  { %4483 = sst [smem:[#allocation45_spill]] %s4432_s4 }
   0x6   :  { %4484 = sst [smem:[#allocation46_spill]] %s4433_s5 }
   0x7   :  { %4485 = sst [smem:[#allocation47_spill]] %s4434_s6 }
   0x8   :  { %4486 = sst [smem:[#allocation48_spill]] %s4435_s7 }
   0x9   :  { %29 = vsyncpa [#allocation4], 0 }
   0xa   :  { %30 = vsyncpa [#allocation7], 0 }
   0xb   :  { %31 = vsyncpa [#allocation10], 0 }
   0xc   :  { %32 = vsyncpa [#allocation13], 0 }
   0xd   :  { %33 = vsyncpa [#allocation16], 0 }
   0xe   :  { %34 = vsyncpa [#allocation19], 0 }
   0xf   :  { %35 = vsyncpa [#allocation22], 0 }
  0x10   :  { %36 = vsyncpa [#allocation25], 0  ;;  %s4487_s24 = sld [smem:[#allocation47_spill]] }
  0x16   :  { %s65_s25 = sshll.u32 %s4487_s24, 4  ;;  %s66_s25 = int_to_ptr.hbm [resolvable:$true] %s65_s25 }
  0x17   :  { %37 = vsyncpa [#allocation5], 0  ;;  %s3332_s5 = smov [#allocation6]   ;;  %s94_s6 = sshll.u32 %s4437_s9, 4  ;;  %s95_s6 = int_to_ptr.hbm [resolvable:$true] %s94_s6 }
  0x18   :  { %s67_s1 = sshll.u32 %s3332_s5, 4  ;;  %s4456_s27 = smov 64   ;;  %s68_s1 = int_to_ptr.vmem [resolvable:$true] %s67_s1 }
  0x19   :  { %s3334_s7 = smov 4   ;;  %s3335_s28 = smov [#allocation9]  }
  0x1a   :  { %73 = dma.hbm_to_vmem [thread:$0]  %s66_s25, 2048, %s68_s1, [#allocation7], %s4456_s27, %s4456_s27, %s3334_s7  }
  0x1b   :  { %s96_s29 = sshll.u32 %s3335_s28, 4  ;;  %s116_s4 = sshll.u32 %s4439_s11, 4  ;;  %s97_s29 = int_to_ptr.vmem [resolvable:$true] %s96_s29  ;;  %s117_s4 = int_to_ptr.hbm [resolvable:$true] %s116_s4 }
  0x1c   :  { %99 = dma.hbm_to_vmem [thread:$0]  %s95_s6, 16, %s97_s29, [#allocation10]  }
  0x1d   :  { %s137_s9 = sshll.u32 %s4441_s13, 4  ;;  %s3336_s5 = smov [#allocation12]   ;;  %s138_s9 = int_to_ptr.hbm [resolvable:$true] %s137_s9 }
  0x1e   :  { %s118_s26 = sshll.u32 %s3336_s5, 4  ;;  %s3337_s25 = smov [#allocation15]   ;;  %s119_s26 = int_to_ptr.vmem [resolvable:$true] %s118_s26 }
  0x1f   :  { %121 = dma.hbm_to_vmem [thread:$0]  %s117_s4, 16, %s119_s26, [#allocation13]  }
  0x20   :  { %s139_s1 = sshll.u32 %s3337_s25, 4  ;;  %s165_s27 = sshll.u32 %s4444_s16, 4  ;;  %s140_s1 = int_to_ptr.vmem [resolvable:$true] %s139_s1  ;;  %s166_s27 = int_to_ptr.hbm [resolvable:$true] %s165_s27 }
  0x21   :  { %s4488_s11 = smov 64   ;;  %s3338_s6 = smov [#allocation18]  }
  0x22   :  { %145 = dma.hbm_to_vmem [thread:$0]  %s138_s9, 4096, %s140_s1, [#allocation16], %s4488_s11, %s4488_s11, %s3334_s7  }
  0x23   :  { %s167_s29 = sshll.u32 %s3338_s6, 4  ;;  %s191_s0 = sshll.u32 %s4446_s18, 4  ;;  %s168_s29 = int_to_ptr.vmem [resolvable:$true] %s167_s29  ;;  %s192_s0 = int_to_ptr.hbm [resolvable:$true] %s191_s0 }
  0x24   :  { %s3339_s4 = smov 16   ;;  %s3340_s30 = smov 1  }
  0x25   :  { %173 = dma.hbm_to_vmem [thread:$0]  %s166_s27, 32, %s168_s29, [#allocation19], %s3339_s4, %s3339_s4, %s3340_s30  }
  0x26   :  { %s3341_s16 = smov [#allocation21]   ;;  %s4489_s25 = sld [smem:[#allocation42_spill]] }
  0x27   :  { %s193_s24 = sshll.u32 %s3341_s16, 4  ;;  %s3342_s18 = smov [#allocation3]   ;;  %s194_s24 = int_to_ptr.vmem [resolvable:$true] %s193_s24 }
  0x28   :  { %199 = dma.hbm_to_vmem [thread:$0]  %s192_s0, 32, %s194_s24, [#allocation22], %s3339_s4, %s3339_s4, %s3340_s30  }
  0x29   :  { %s46_s1 = sshll.u32 %s3342_s18, 4  ;;  %s80_s27 = sshll.u32 %s4436_s8, 4  ;;  %s47_s1 = int_to_ptr.vmem [resolvable:$true] %s46_s1  ;;  %s81_s27 = int_to_ptr.hbm [resolvable:$true] %s80_s27 }
  0x2a   :  { %s3343_s6 = smov 128   ;;  %s3344_s29 = smov 8  }
  0x2b   :  { %s3345_s13 = smov [#allocation8]   ;;  %s105_s0 = sshll.u32 %s4438_s10, 4  ;;  %s106_s0 = int_to_ptr.hbm [resolvable:$true] %s105_s0 }
  0x2c   :  { %s44_s9 = sshll.u32 %s4489_s25, 4  ;;  %s82_s3 = sshll.u32 %s3345_s13, 4  ;;  %s45_s9 = int_to_ptr.hbm [resolvable:$true] %s44_s9  ;;  %s83_s3 = int_to_ptr.vmem [resolvable:$true] %s82_s3 }
  0x2d   :  { %52 = dma.hbm_to_vmem [thread:$0]  %s45_s9, 384, %s47_s1, [#allocation4], %s3343_s6, %s3343_s6, %s3344_s29  }
  0x2e   :  { %88 = dma.hbm_to_vmem [thread:$0]  %s81_s27, 2048, %s83_s3, [#allocation7], %s4488_s11, %s4488_s11, %s3334_s7  }
  0x2f   :  { %s127_s26 = sshll.u32 %s4440_s12, 4  ;;  %s3346_s25 = smov [#allocation11]   ;;  %s128_s26 = int_to_ptr.hbm [resolvable:$true] %s127_s26 }
  0x30   :  { %s107_s18 = sshll.u32 %s3346_s25, 4  ;;  %s3347_s9 = smov [#allocation14]   ;;  %s108_s18 = int_to_ptr.vmem [resolvable:$true] %s107_s18 }
  0x31   :  { %110 = dma.hbm_to_vmem [thread:$0]  %s106_s0, 16, %s108_s18, [#allocation10]  }
  0x32   :  { %s129_s1 = sshll.u32 %s3347_s9, 4  ;;  %s152_s10 = sshll.u32 %s4443_s15, 4  ;;  %s130_s1 = int_to_ptr.vmem [resolvable:$true] %s129_s1  ;;  %s153_s10 = int_to_ptr.hbm [resolvable:$true] %s152_s10 }
  0x33   :  { %132 = dma.hbm_to_vmem [thread:$0]  %s128_s26, 16, %s130_s1, [#allocation13]  }
  0x34   :  { %s178_s3 = sshll.u32 %s4445_s17, 4  ;;  %s3348_s16 = smov [#allocation17]   ;;  %s179_s3 = int_to_ptr.hbm [resolvable:$true] %s178_s3 }
  0x35   :  { %s154_s12 = sshll.u32 %s3348_s16, 4  ;;  %s3349_s5 = smov [#allocation20]   ;;  %s155_s12 = int_to_ptr.vmem [resolvable:$true] %s154_s12 }
  0x36   :  { %160 = dma.hbm_to_vmem [thread:$0]  %s153_s10, 4096, %s155_s12, [#allocation16], %s4488_s11, %s4488_s11, %s3334_s7  }
  0x37   :  { %s180_s0 = sshll.u32 %s3349_s5, 4  ;;  %s204_s15 = sshll.u32 %s4447_s19, 4  ;;  %s181_s0 = int_to_ptr.vmem [resolvable:$true] %s180_s0  ;;  %s205_s15 = int_to_ptr.hbm [resolvable:$true] %s204_s15 }
  0x38   :  { %186 = dma.hbm_to_vmem [thread:$0]  %s179_s3, 32, %s181_s0, [#allocation19], %s3339_s4, %s3339_s4, %s3340_s30  }
  0x39   :  { %s217_s25 = sshll.u32 %s4448_s20, 4  ;;  %s3350_s18 = smov [#allocation23]   ;;  %s218_s25 = int_to_ptr.hbm [resolvable:$true] %s217_s25 }
  0x3a   :  { %s206_s9 = sshll.u32 %s3350_s18, 4  ;;  %s3351_s7 = smov [#allocation24]   ;;  %s207_s9 = int_to_ptr.vmem [resolvable:$true] %s206_s9 }
  0x3b   :  { %212 = dma.hbm_to_vmem [thread:$0]  %s205_s15, 32, %s207_s9, [#allocation22], %s3339_s4, %s3339_s4, %s3340_s30  }
  0x3c   :  { %s219_s19 = sshll.u32 %s3351_s7, 4  ;;  %s220_s19 = int_to_ptr.vmem [resolvable:$true] %s219_s19 }
  0x3d   :  { %225 = dma.hbm_to_vmem [thread:$0]  %s218_s25, 32, %s220_s19, [#allocation25], %s3339_s4, %s3339_s4, %s3340_s30  }
  0x3e   :  { %3314 = dma.done.wait [#allocation4], 384  }
  0x3f   :  { %3315 = vsyncadd [#allocation4], 4294966912 }
  0x40   :  { %3316 = dma.done.wait [#allocation7], 4096  }
  0x41   :  { %3317 = vsyncadd [#allocation7], 4294963200 }
  0x42   :  { %3318 = dma.done.wait [#allocation10], 32  }
  0x43   :  { %3319 = vsyncadd [#allocation10], 4294967264 }
  0x44   :  { %3320 = dma.done.wait [#allocation13], 32  }
  0x45   :  { %3321 = vsyncadd [#allocation13], 4294967264 }
  0x46   :  { %3322 = dma.done.wait [#allocation16], 8192  }
  0x47   :  { %3323 = vsyncadd [#allocation16], 4294959104 }
  0x48   :  { %3324 = dma.done.wait [#allocation19], 64  }
  0x49   :  { %3325 = vsyncadd [#allocation19], 4294967232 }
  0x4a   :  { %3326 = dma.done.wait [#allocation22], 64  }
  0x4b   :  { %3327 = vsyncadd [#allocation22], 4294967232 }
  0x4c   :  { %3328 = dma.done.wait [#allocation25], 32  }
  0x4d   :  { %3329 = vsyncadd [#allocation25], 4294967264  ;;  %v4470_v0 = vmov 0   ;;  %s4490_s4 = sld [smem:[#allocation44_spill]]  ;;  %v2922_v6 = vld [vmem:[#allocation12] ss:$0 sm:$0xff] }
  0x4e   :  { %2920 = vset.pattern.permute.xlu1 %v4470_v0  ;;  %2919 = vset.pattern.permute.xlu0 %v4470_v0  ;;  %s4491_s10 = sld [smem:[#allocation43_spill]]  ;;  %v2923_v8 = vld [vmem:[#allocation14] ss:$0 sm:$0xff]  ;;  %v2824_v22 = vld [vmem:[#allocation8 + $0x38] sm:$0xff]  ;;  %v2823_v28 = vld [vmem:[#allocation8 + $0x30] sm:$0xff]  ;;  %s3360_s20 = smov [#allocation26]  }
  0x4f   :  { %2921 = vset.pattern.permute.xlu2 %v4470_v0  ;;  %v2808_v23 = vld [vmem:[#allocation6 + $0x38] sm:$0xff]  ;;  %1432 = vmatpush.bf16.msra.mxu2 %v2824_v22  ;;  %v2807_v29 = vld [vmem:[#allocation6 + $0x30] sm:$0xff]  ;;  %v4462_v34 = vmov 2102212464   ;;  %v4460_v36 = vmov 920167782  }
  0x50   :  { %v2816_v26 = vld [vmem:[#allocation6 + $0x78] sm:$0xff]  ;;  %757 = vmatpush.bf16.msra.mxu0 %v2808_v23  ;;  %v2815_v32 = vld [vmem:[#allocation6 + $0x70] sm:$0xff]  ;;  %v2822_v43 = vld [vmem:[#allocation8 + $0x28] sm:$0xff]  ;;  %v3355_v54 = vmov 1326507024   ;;  %s4493_s0 = sld [smem:[#allocation46_spill]] }
  0x51   :  { %v2832_v27 = vld [vmem:[#allocation8 + $0x78] sm:$0xff]  ;;  %771 = vmatpush.bf16.msra.mxu1 %v2816_v26  ;;  %v2831_v33 = vld [vmem:[#allocation8 + $0x70] sm:$0xff]  ;;  %v2806_v44 = vld [vmem:[#allocation6 + $0x28] sm:$0xff]  ;;  %s4497_s15 = sld [smem:[#allocation41_spill]]  ;;  %s2400_s11 = sshll.u32 %s3360_s20, 4  ;;  %s2401_s11 = int_to_ptr.vmem [resolvable:$true] %s2400_s11 }
  0x52   :  { %1450 = vmatpush.bf16.msra.mxu3 %v2832_v27  ;;  %v2814_v50 = vld [vmem:[#allocation6 + $0x68] sm:$0xff]  ;;  %v2821_v60 = vld [vmem:[#allocation8 + $0x20] sm:$0xff]  ;;  %v2820_v23 = vld [vmem:[#allocation8 + $0x18] sm:$0xff]  ;;  %s4523_s19 = sld [smem:[#allocation45_spill]]  ;;  %s2402_s1 = sshll.u32 %s4451_s23, 4  ;;  %s2403_s1 = int_to_ptr.hbm [resolvable:$true] %s2402_s1 }
  0x53   :  { %v842_v1 = vld [vmem:[%s4490_s4 + $0x10] sm:$0xff]  ;;  %v840_v2 = vld [vmem:[%s4490_s4] sm:$0xff]  ;;  %v841_v4 = vld [vmem:[%s4490_s4 + $0x8] sm:$0xff]  ;;  %1433 = vmatpush.bf16.msra.mxu2 %v2823_v28  ;;  %s4524_s4 = sld [smem:[#allocation48_spill]] }
  0x54   :  { %855 = vperm.xlu1 %2920, %v842_v1   ;;  %845 = vperm.xlu0 %2919, %v840_v2   ;;  %v325_v3 = vld [vmem:[%s4491_s10 + $0x8] sm:$0xff]  ;;  %v324_v5 = vld [vmem:[%s4491_s10] sm:$0xff]  ;;  %v2805_v61 = vld [vmem:[#allocation6 + $0x20] sm:$0xff]  ;;  %v4468_v1 = vmov 683565275  }
  0x55   :  { %333 = vperm.xlu2 %2921, %v325_v3   ;;  %758 = vmatpush.bf16.msra.mxu0 %v2807_v29  ;;  %v2830_v51 = vld [vmem:[#allocation8 + $0x68] sm:$0xff]  ;;  %v2813_v62 = vld [vmem:[#allocation6 + $0x60] sm:$0xff]  ;;  %v4466_v3 = vmov 2475754826   ;;  %v2804_v26 = vld [vmem:[#allocation6 + $0x18] sm:$0xff] }
  0x56   :  { %772 = vmatpush.bf16.msra.mxu1 %v2815_v32  ;;  %1451 = vmatpush.bf16.msra.mxu3 %v2831_v33 }
  0x57   :  { %1434 = vmatpush.bf16.msra.mxu2 %v2822_v43 }
  0x59   :  { %759 = vmatpush.bf16.msra.mxu0 %v2806_v44 }
  0x5a   :  { %773 = vmatpush.bf16.msra.mxu1 %v2814_v50  ;;  %1452 = vmatpush.bf16.msra.mxu3 %v2830_v51 }
  0x5b   :  { %1435 = vmatpush.bf16.msra.mxu2 %v2821_v60 }
  0x5c   :  { %850 = vperm.xlu0 %2919, %v841_v4   ;;  %328 = vperm.xlu1 %2920, %v324_v5  }
  0x5d   :  { %760 = vmatpush.bf16.msra.mxu0 %v2805_v61  ;;  %v3684_v61 = vld [vmem:[#allocation3] sm:$0xff] }
  0x5e   :  { %774 = vmatpush.bf16.msra.mxu1 %v2813_v62  ;;  %v3686_v62 = vld [vmem:[#allocation3 + $0x8] sm:$0xff] }
  0x5f   :  { %1436 = vmatpush.bf16.msra.mxu2 %v2820_v23  ;;  %v290_v23 = vld [vmem:[%s4497_s15 + $0x8] sm:$0xff] }
  0x61   :  { %761 = vmatpush.bf16.msra.mxu0 %v2804_v26  ;;  %v1329_v26 = vpack.c.bf16 %v3686_v62, %v3684_v61  ;;  %v2825_v61 = vld [vmem:[#allocation8 + $0x40] sm:$0xff] }
  0xaf   :  { %v334_v7 = vpop.permute.xlu2 %333 }
  0xb0   :  { %v340_v9 = vmul.f32 %v2922_v6, %v334_v7  ;;  %v2829_v7 = vld [vmem:[#allocation8 + $0x60] sm:$0xff] }
  0xb1   :  { %1453 = vmatpush.bf16.msra.mxu3 %v2829_v7  ;;  %v2802_v7 = vld [vmem:[#allocation6 + $0x8] sm:$0xff] }
  0xb2   :  { %v3571_v10 = vadd.f32 %v2923_v8, %v340_v9 }
  0xb4   :  { %v504_v11 = vand.u32 2139095040, %v3571_v10  ;;  %v4458_v45 = vand.u32 2147483647, %v3571_v10 }
  0xb6   :  { %v505_v12 = vshrl.u32 %v504_v11, 23  ;;  %v3609_v63 = vand.u32 8388607, %v4458_v45 }
  0xb8   :  { %v2425_v13 = vadd.s32 4294967169, %v505_v12  ;;  %v509_v33 = vor.u32 8388608, %v3609_v63 }
  0xba   :  { %v511_v14 = vadd.s32 1, %v2425_v13  ;;  %v4464_v13 = vmov 2131351028   ;;  %v3682_v60 = vshll.u32 %v509_v33, 8 }
  0xbc   :  { %vm512_vm0 = vcmp.gt.s32.totalorder %v511_v14, 0 }
  0xbd   :  { %v513_v15 = vsel %vm512_vm0, %v511_v14, 0 }
  0xbe   :  { %v3574_v16 = vand.u32 31, %v513_v15  ;;  %v3589_v41 = vshrl.u32 %v513_v15, 5 }
  0xc0   :  { %v3577_v21 = vsub.s32 32, %v3574_v16  ;;  %v527_v35 = vshll.u32 %v4462_v34, %v3574_v16  ;;  %v3596_v53 = vshll.u32 %v4460_v36, %v3574_v16  ;;  %vm536_vm1 = vcmp.lt.s32.totalorder %v3589_v41, 4 }
  0xc1   :  { %v518_v2 = vshll.u32 %v4468_v1, %v3574_v16  ;;  %v521_v12 = vshll.u32 %v4466_v3, %v3574_v16  ;;  %vm533_vm4 = vcmp.lt.s32.totalorder %v3589_v41, 1  ;;  %vm535_vm5 = vcmp.lt.s32.totalorder %v3589_v41, 3 }
  0xc2   :  { %v528_v37 = vshrl.u32 %v4460_v36, %v3577_v21  ;;  %v3600_v55 = vshrl.u32 %v3355_v54, %v3577_v21  ;;  %v519_v4 = vshrl.u32 %v4466_v3, %v3577_v21  ;;  %v522_v14 = vshrl.u32 %v4464_v13, %v3577_v21 }
  0xc3   :  { %vm534_vm6 = vcmp.lt.s32.totalorder %v3589_v41, 2 }
  0xc4   :  { %v3592_v52 = vor.u32 %v528_v37, %v527_v35  ;;  %v532_v29 = vor.u32 %v3600_v55, %v3596_v53  ;;  %v3654_v35 = vor.u32 %v519_v4, %v518_v2  ;;  %v3656_v37 = vor.u32 %v522_v14, %v521_v12  ;;  %v2811_v53 = vld [vmem:[#allocation6 + $0x50] sm:$0xff] }
  0xc5   :  { %v2827_v55 = vld [vmem:[#allocation8 + $0x50] sm:$0xff] }
  0xc6   :  { %v856_v17 = vpop.permute.xlu1 %855  ;;  %v846_v18 = vpop.permute.xlu0 %845  ;;  %v546_v50 = vsel %vm536_vm1, %v532_v29, 1326507024  ;;  %v541_v63 = vsel %vm533_vm4, %v3654_v35, %v3656_v37  ;;  %v3718_v29 = vand.u32 65535, %v3682_v60 }
  0xc7   :  { %v860_v19 = vmul.f32 %v2922_v6, %v856_v17  ;;  %v858_v20 = vmul.f32 %v2922_v6, %v846_v18  ;;  %v524_v18 = vshll.u32 %v4464_v13, %v3574_v16  ;;  %v542_v16 = vsel %vm536_vm1, %v3592_v52, 920167782 }
  0xc8   :  { %v547_v14 = vsel %vm535_vm5, %v3592_v52, %v546_v50 }
  0xc9   :  { %v3579_v24 = vadd.f32 %v2923_v8, %v860_v19  ;;  %v3581_v25 = vadd.f32 %v2923_v8, %v858_v20  ;;  %v525_v19 = vshrl.u32 %v4462_v34, %v3577_v21 }
  0xcb   :  { %4492 = vst [vmem:[#allocation36_spill] sm:$0xff] %v3579_v24  ;;  %v1177_v30 = vand.u32 2139095040, %v3579_v24  ;;  %v867_v31 = vand.u32 2139095040, %v3581_v25 }
  0xcd   :  { %v1178_v38 = vshrl.u32 %v1177_v30, 23  ;;  %v868_v39 = vshrl.u32 %v867_v31, 23  ;;  %v2812_v30 = vld [vmem:[#allocation6 + $0x58] sm:$0xff] }
  0xce   :  { %v851_v40 = vpop.permute.xlu0 %850  ;;  %v329_v42 = vpop.permute.xlu1 %328  ;;  %v2828_v31 = vld [vmem:[#allocation8 + $0x58] sm:$0xff]  ;;  %775 = vmatpush.bf16.msra.mxu1 %v2812_v30 }
  0xcf   :  { %v2500_v46 = vadd.s32 4294967169, %v1178_v38  ;;  %v2494_v47 = vadd.s32 4294967169, %v868_v39  ;;  %v859_v48 = vmul.f32 %v2922_v6, %v851_v40  ;;  %v339_v49 = vmul.f32 %v2922_v6, %v329_v42  ;;  %1454 = vmatpush.bf16.msra.mxu3 %v2828_v31 }
  0xd0   :  { %v3662_v42 = vor.u32 %v525_v19, %v524_v18 }
  0xd1   :  { %v1184_v56 = vadd.s32 1, %v2500_v46  ;;  %v874_v57 = vadd.s32 1, %v2494_v47  ;;  %v3602_v58 = vadd.f32 %v2923_v8, %v859_v48  ;;  %v3604_v59 = vadd.f32 %v2923_v8, %v339_v49  ;;  %v2833_v8 = vld [vmem:[%s4493_s0] sm:$0xff]  ;;  %v2819_v46 = vld [vmem:[#allocation8 + $0x10] sm:$0xff] }
  0xd2   :  { %1509 = vxpose.xlu2.c.b16.start [1/2] (short) (narrow) %v2833_v8, 16  ;;  %v2803_v47 = vld [vmem:[#allocation6 + $0x10] sm:$0xff]  ;;  %v543_v2 = vsel %vm535_vm5, %v3662_v42, %v542_v16  ;;  %1437 = vmatpush.bf16.msra.mxu2 %v2819_v46  ;;  %v2810_v8 = vld [vmem:[#allocation6 + $0x48] sm:$0xff]  ;;  %v545_v12 = vsel %vm533_vm4, %v3656_v37, %v3662_v42 }
  0xd3   :  { %vm1185_vm2 = vcmp.gt.s32.totalorder %v1184_v56, 0  ;;  %vm875_vm3 = vcmp.gt.s32.totalorder %v874_v57, 0  ;;  %v1022_v5 = vand.u32 2139095040, %v3602_v58  ;;  %v349_v6 = vand.u32 2139095040, %v3604_v59  ;;  %762 = vmatpush.bf16.msra.mxu0 %v2803_v47  ;;  %776 = vmatpush.bf16.msra.mxu1 %v2811_v53  ;;  %v2817_v47 = vld [vmem:[#allocation8] sm:$0xff] }
  0xd4   :  { %v3620_v9 = vsel %vm1185_vm2, %v1184_v56, 0  ;;  %v3622_v11 = vsel %vm875_vm3, %v874_v57, 0  ;;  %v4459_v57 = vand.u32 2147483647, %v3604_v59  ;;  %1455 = vmatpush.bf16.msra.mxu3 %v2827_v55  ;;  %v3727_v31 = vsel %vm534_vm6, %v541_v63, %v543_v2  ;;  %v2809_v55 = vld [vmem:[#allocation6 + $0x40] sm:$0xff] }
  0xd5   :  { %v3629_v15 = vand.u32 31, %v3620_v9  ;;  %v3632_v17 = vand.u32 31, %v3622_v11  ;;  %v1023_v20 = vshrl.u32 %v1022_v5, 23  ;;  %v350_v22 = vshrl.u32 %v349_v6, 23  ;;  %v2818_v6 = vld [vmem:[#allocation8 + $0x8] sm:$0xff] }
  0xd6   :  { %v353_v52 = vand.u32 8388607, %v4459_v57  ;;  %v3731_v33 = vsel %vm534_vm6, %v545_v12, %v547_v14  ;;  %1438 = vmatpush.bf16.msra.mxu2 %v2818_v6  ;;  %v3745_v63 = vshrl.u32 %v3682_v60, 16  ;;  %v574_v57 = vand.u32 65535, %v3727_v31 }
  0xd7   :  { %4494 = vst [vmem:[#allocation37_spill] sm:$0xff] %v3629_v15  ;;  %v3639_v27 = vsub.s32 32, %v3629_v15  ;;  %v3643_v28 = vshll.u32 %v4460_v36, %v3629_v15  ;;  %v3651_v32 = vsub.s32 32, %v3632_v17  ;;  %v2497_v39 = vadd.s32 4294967169, %v1023_v20  ;;  %v2826_v20 = vld [vmem:[#allocation8 + $0x48] sm:$0xff]  ;;  %763 = vmatpush.bf16.msra.mxu0 %v2802_v7  ;;  %777 = vmatpush.bf16.msra.mxu1 %v2810_v8 }
  0xd8   :  { %v2422_v40 = vadd.s32 4294967169, %v350_v22  ;;  %v3666_v43 = vshll.u32 %v4460_v36, %v3632_v17  ;;  %v289_v22 = vld [vmem:[%s4497_s15] sm:$0xff]  ;;  %1456 = vmatpush.bf16.msra.mxu3 %v2826_v20  ;;  %v354_v6 = vor.u32 8388608, %v353_v52  ;;  %v3756_v20 = vshrl.u32 %v3620_v9, 5 }
  0xd9   :  { %4495 = vst [vmem:[#allocation38_spill] sm:$0xff] %v3643_v28  ;;  %v3660_v38 = vshrl.u32 %v3355_v54, %v3639_v27  ;;  %v3670_v44 = vshrl.u32 %v3355_v54, %v3651_v32  ;;  %v1029_v49 = vadd.s32 1, %v2497_v39  ;;  %v656_v50 = vpack.c.bf16 %v290_v23, %v289_v22 }
  0xda   :  { %v356_v51 = vadd.s32 1, %v2422_v40  ;;  %4498 = vst [vmem:[#allocation40_spill] sm:$0xff] %v3756_v20  ;;  %1439 = vmatpush.bf16.msra.mxu2 %v2817_v47  ;;  %v3759_v52 = vshrl.u32 %v3622_v11, 5  ;;  %v3771_v11 = vshll.u32 %v4462_v34, %v3629_v15 }
  0xdb   :  { %4496 = vst [vmem:[#allocation39_spill] sm:$0xff] %v3660_v38  ;;  %vm1030_vm7 = vcmp.gt.s32.totalorder %v1029_v49, 0  ;;  %778 = vmatpush.bf16.msra.mxu1 %v2809_v55 }
  0xdc   :  { %vm357_vm8 = vcmp.gt.s32.totalorder %v356_v51, 0  ;;  %v3695_v4 = vsel %vm1030_vm7, %v1029_v49, 0  ;;  %v2801_v49 = vld [vmem:[#allocation6] sm:$0xff]  ;;  %1457 = vmatpush.bf16.msra.mxu3 %v2825_v61  ;;  %v553_v61 = vshrl.u32 %v3731_v33, 16 }
  0xdd   :  { %v358_v5 = vsel %vm357_vm8, %v356_v51, 0  ;;  %v3705_v18 = vand.u32 31, %v3695_v4  ;;  %764 = vmatpush.bf16.msra.mxu0 %v2801_v49  ;;  %1440 = vmatmul.bf16.vlgmr.msra.gmra.mxu2 %v1329_v26  ;;  %v3788_v26 = vshrl.u32 %v4460_v36, %v3651_v32 }
  0xde   :  { %v360_v19 = vand.u32 31, %v358_v5  ;;  %v3723_v30 = vshrl.u32 %v358_v5, 5 }
  0xdf   :  { %v3721_v16 = vsub.s32 32, %v3705_v18  ;;  %v3737_v51 = vshll.u32 %v4460_v36, %v3705_v18 }
  0xe0   :  { %v361_v39 = vsub.s32 32, %v360_v19  ;;  %v372_v40 = vshll.u32 %v4462_v34, %v360_v19  ;;  %v375_v46 = vshll.u32 %v4460_v36, %v360_v19  ;;  %v363_v62 = vshll.u32 %v4468_v1, %v360_v19  ;;  %765 = vmatmul.bf16.vlgmr.msra.gmra.mxu0 %v656_v50 }
  0xe1   :  { %v3741_v53 = vshrl.u32 %v3355_v54, %v3721_v16  ;;  %vm381_vm9 = vcmp.lt.s32.totalorder %v3723_v30, 4  ;;  %v366_v8 = vshll.u32 %v4466_v3, %v360_v19  ;;  %v369_v12 = vshll.u32 %v4464_v13, %v360_v19 }
  0xe2   :  { %v373_v2 = vshrl.u32 %v4460_v36, %v361_v39  ;;  %v376_v5 = vshrl.u32 %v3355_v54, %v361_v39  ;;  %v364_v7 = vshrl.u32 %v4466_v3, %v361_v39  ;;  %v367_v14 = vshrl.u32 %v4464_v13, %v361_v39 }
  0xe3   :  { %vm378_vm10 = vcmp.lt.s32.totalorder %v3723_v30, 1  ;;  %v370_v9 = vshrl.u32 %v4462_v34, %v361_v39  ;;  %vm380_vm11 = vcmp.lt.s32.totalorder %v3723_v30, 3  ;;  %v362_v19 = vshrl.u32 %v4468_v1, %v361_v39 }
  0xe4   :  { %v374_v22 = vor.u32 %v373_v2, %v372_v40  ;;  %v377_v23 = vor.u32 %v376_v5, %v375_v46  ;;  %v365_v54 = vor.u32 %v364_v7, %v363_v62  ;;  %v368_v48 = vor.u32 %v367_v14, %v366_v8 }
  0xe5   :  { %v3767_v40 = vshll.u32 %v354_v6, 8  ;;  %vm379_vm12 = vcmp.lt.s32.totalorder %v3723_v30, 2  ;;  %v371_v47 = vor.u32 %v370_v9, %v369_v12  ;;  %v3784_v62 = vshll.u32 %v4462_v34, %v3632_v17 }
  0xe6   :  { %v391_v45 = vsel %vm381_vm9, %v377_v23, 1326507024  ;;  %v387_v46 = vsel %vm381_vm9, %v374_v22, 920167782  ;;  %v386_v49 = vsel %vm378_vm10, %v365_v54, %v368_v48  ;;  %v3792_v39 = vshrl.u32 %v4468_v1, %v3577_v21 }
  0xe7   :  { %v392_v55 = vsel %vm380_vm11, %v374_v22, %v391_v45  ;;  %v552_v50 = vand.u32 65535, %v3731_v33  ;;  %v388_v2 = vsel %vm380_vm11, %v371_v47, %v387_v46  ;;  %v390_v45 = vsel %vm378_vm10, %v368_v48, %v371_v47 }
  0xe8   :  { %v395_v5 = vand.u32 65535, %v3767_v40  ;;  %v396_v6 = vshrl.u32 %v3767_v40, 16  ;;  %v389_v7 = vsel %vm379_vm12, %v386_v49, %v388_v2  ;;  %v393_v12 = vsel %vm379_vm12, %v390_v45, %v392_v55 }
  0xe9   :  { %v3808_v21 = vsel %vm536_vm1, %v3662_v42, 2102212464  ;;  %v3811_v33 = vmul.u32 %v553_v61, %v3718_v29  ;;  %v382_v8 = vsel %vm378_vm10, %v362_v19, %v365_v54  ;;  %v397_v14 = vand.u32 65535, %v393_v12 }
  0xea   :  { %v398_v22 = vshrl.u32 %v393_v12, 16  ;;  %v419_v23 = vand.u32 65535, %v389_v7  ;;  %v383_v9 = vsel %vm381_vm9, %v371_v47, 2102212464  ;;  %v420_v46 = vshrl.u32 %v389_v7, 16 }
  0xeb   :  { %v554_v49 = vmul.u32 %v552_v50, %v3718_v29  ;;  %v3819_v55 = vmul.u32 %v552_v50, %v3745_v63  ;;  %v399_v42 = vmul.u32 %v397_v14, %v395_v5  ;;  %v401_v45 = vmul.u32 %v397_v14, %v396_v6 }
  0xec   :  { %v400_v2 = vmul.u32 %v398_v22, %v395_v5  ;;  %v421_v36 = vmul.u32 %v419_v23, %v395_v5  ;;  %v422_v56 = vmul.u32 %v420_v46, %v395_v5  ;;  %v423_v54 = vmul.u32 %v419_v23, %v396_v6 }
  0xed   :  { %v558_v19 = vshll.u32 %v3811_v33, 16  ;;  %v384_v12 = vsel %vm380_vm11, %v368_v48, %v383_v9  ;;  %v402_v47 = vmul.u32 %v398_v22, %v396_v6  ;;  %v405_v34 = vshll.u32 %v401_v45, 16 }
  0xee   :  { %v403_v7 = vshll.u32 %v400_v2, 16  ;;  %v424_v13 = vmul.u32 %v420_v46, %v396_v6  ;;  %v425_v3 = vshll.u32 %v422_v56, 16  ;;  %v427_v50 = vshll.u32 %v423_v54, 16 }
  0xef   :  { %v557_v1 = vmul.u32 %v553_v61, %v3745_v63  ;;  %v559_v0 = vshrl.u32 %v3811_v33, 16  ;;  %v560_v5 = vshll.u32 %v3819_v55, 16  ;;  %v4499_v23 = vmov 0  }
  0xf0   :  { %vm407_vm13 = vc.u32 %v399_v42, %v403_v7  ;;  %v409_v14 = vadd.s32 %v403_v7, %v399_v42  ;;  %vm429_vm14 = vc.u32 %v421_v36, %v425_v3  ;;  %v431_v38 = vadd.s32 %v425_v3, %v421_v36 }
  0xf1   :  { %v408_v28 = vsel %vm407_vm13, 1, %v4499_v23  ;;  %vm562_vm15 = vc.u32 %v554_v49, %v558_v19  ;;  %v430_v22 = vsel %vm429_vm14, 1, %v4499_v23  ;;  %v404_v9 = vshrl.u32 %v400_v2, 16 }
  0xf2   :  { %v410_v48 = vadd.s32 %v408_v28, %v402_v47  ;;  %vm411_vm0 = vc.u32 %v409_v14, %v405_v34  ;;  %v563_v6 = vsel %vm562_vm15, 1, %v4499_v23  ;;  %v432_v46 = vadd.s32 %v430_v22, %v424_v13 }
  0xf3   :  { %v412_v61 = vsel %vm411_vm0, 1, %v4499_v23  ;;  %vm433_vm1 = vc.u32 %v431_v38, %v427_v50  ;;  %v564_v7 = vadd.s32 %v558_v19, %v554_v49  ;;  %v565_v15 = vadd.s32 %v563_v6, %v557_v1 }
  0xf4   :  { %v414_v42 = vadd.s32 %v412_v61, %v410_v48  ;;  %v434_v33 = vsel %vm433_vm1, 1, %v4499_v23  ;;  %v426_v24 = vshrl.u32 %v422_v56, 16  ;;  %v575_v36 = vshrl.u32 %v3727_v31, 16 }
  0xf5   :  { %v436_v20 = vadd.s32 %v434_v33, %v432_v46  ;;  %v578_v34 = vmul.u32 %v574_v57, %v3745_v63  ;;  %v406_v3 = vshrl.u32 %v401_v45, 16  ;;  %v428_v47 = vshrl.u32 %v423_v54, 16 }
  0xf6   :  { %v415_v28 = vadd.s32 %v414_v42, %v404_v9  ;;  %vm566_vm2 = vc.u32 %v564_v7, %v560_v5  ;;  %v576_v13 = vmul.u32 %v574_v57, %v3718_v29  ;;  %v577_v48 = vmul.u32 %v575_v36, %v3718_v29 }
  0xf7   :  { %v437_v2 = vadd.s32 %v436_v20, %v426_v24  ;;  %v567_v14 = vsel %vm566_vm2, 1, %v4499_v23  ;;  %v385_v1 = vsel %vm379_vm12, %v382_v8, %v384_v12  ;;  %v3842_v49 = vadd.s32 %v431_v38, %v427_v50 }
  0xf8   :  { %v3840_v56 = vadd.s32 %v415_v28, %v406_v3  ;;  %v569_v31 = vadd.s32 %v567_v14, %v565_v15  ;;  %v579_v45 = vmul.u32 %v575_v36, %v3745_v63  ;;  %v580_v54 = vshll.u32 %v577_v48, 16 }
  0xf9   :  { %v438_v19 = vadd.s32 %v437_v2, %v428_v47  ;;  %v582_v5 = vshll.u32 %v578_v34, 16  ;;  %v892_v24 = vor.u32 %v3788_v26, %v3784_v62  ;;  %v561_v57 = vshrl.u32 %v3819_v55, 16 }
  0xfa   :  { %vm441_vm3 = vc.u32 %v3840_v56, %v3842_v49  ;;  %v864_v29 = vand.u32 2147483647, %v3581_v25  ;;  %v570_v20 = vadd.s32 %v569_v31, %v559_v0  ;;  %vm584_vm7 = vc.u32 %v576_v13, %v580_v54 }
  0xfb   :  { %v442_v30 = vadd.s32 1, %v438_v19  ;;  %v586_v38 = vadd.s32 %v580_v54, %v576_v13  ;;  %v439_v15 = vmul.u32 %v3767_v40, %v385_v1  ;;  %v537_v63 = vsel %vm533_vm4, %v3792_v39, %v3654_v35 }
  0xfc   :  { %v539_v62 = vsel %vm535_vm5, %v3656_v37, %v3808_v21  ;;  %v585_v26 = vsel %vm584_vm7, 1, %v4499_v23  ;;  %v581_v55 = vshrl.u32 %v577_v48, 16  ;;  %v583_v50 = vshrl.u32 %v578_v34, 16 }
  0xfd   :  { %v443_v8 = vsel %vm441_vm3, %v442_v30, %v438_v19  ;;  %v587_v12 = vadd.s32 %v585_v26, %v579_v45  ;;  %vm588_vm8 = vc.u32 %v586_v38, %v582_v5  ;;  %v871_v22 = vand.u32 8388607, %v864_v29 }
  0xfe   :  { %v444_v0 = vadd.s32 %v443_v8, %v439_v15  ;;  %v589_v40 = vsel %vm588_vm8, 1, %v4499_v23  ;;  %v571_v6 = vadd.s32 %v570_v20, %v561_v57  ;;  %v590_v35 = vadd.s32 %v586_v38, %v582_v5 }
  0xff   :  { %v591_v39 = vadd.s32 %v589_v40, %v587_v12  ;;  %v4500_v9 = vmov 683565275   ;;  %v4501_v21 = vmov 2475754826   ;;  %v4502_v33 = vmov 2131351028  }
 0x100   :  { %v881_v61 = vshll.u32 %v4500_v9, %v3632_v17  ;;  %v445_v37 = vadd.s32 536870912, %v444_v0  ;;  %v882_v46 = vshrl.u32 %v4501_v21, %v3651_v32  ;;  %v884_v42 = vshll.u32 %v4501_v21, %v3632_v17 }
 0x101   :  { %v885_v7 = vshrl.u32 %v4502_v33, %v3651_v32  ;;  %v540_v36 = vsel %vm534_vm6, %v537_v63, %v539_v62  ;;  %v592_v34 = vadd.s32 %v591_v39, %v581_v55  ;;  %v887_v3 = vshll.u32 %v4502_v33, %v3632_v17 }
 0x102   :  { %v4503_v28 = vmov 2102212464   ;;  %vm899_vm4 = vcmp.lt.s32.totalorder %v3759_v52, 4  ;;  %v3879_v2 = vshrl.u32 %v445_v37, 30  ;;  %v883_v14 = vor.u32 %v882_v46, %v881_v61 }
 0x103   :  { %v888_v47 = vshrl.u32 %v4503_v28, %v3651_v32  ;;  %v3881_v13 = vor.u32 %v885_v7, %v884_v42  ;;  %v905_v48 = vsel %vm899_vm4, %v892_v24, 920167782  ;;  %v593_v1 = vadd.s32 %v592_v34, %v583_v50 }
 0x104   :  { %v872_v41 = vor.u32 8388608, %v871_v22  ;;  %v4504_v19 = vor.u32 %v3670_v44, %v3666_v43  ;;  %v447_v45 = vshll.u32 %v3879_v2, 30  ;;  %v594_v54 = vmul.u32 %v3682_v60, %v540_v36 }
 0x105   :  { %v889_v31 = vor.u32 %v888_v47, %v887_v3  ;;  %vm596_vm5 = vc.u32 %v571_v6, %v590_v35  ;;  %v4505_v5 = vmov 920167782   ;;  %v597_v30 = vadd.s32 1, %v593_v1 }
 0x106   :  { %v909_v17 = vsel %vm899_vm4, %v4504_v19, 1326507024  ;;  %v1046_v57 = vshrl.u32 %v4505_v5, %v3721_v16  ;;  %vm896_vm6 = vcmp.lt.s32.totalorder %v3759_v52, 1  ;;  %vm898_vm9 = vcmp.lt.s32.totalorder %v3759_v52, 3 }
 0x107   :  { %v3896_v20 = vsub.s32 %v444_v0, %v447_v45  ;;  %v904_v43 = vsel %vm896_vm6, %v883_v14, %v3881_v13  ;;  %v906_v44 = vsel %vm898_vm9, %v889_v31, %v905_v48  ;;  %v908_v60 = vsel %vm896_vm6, %v3881_v13, %v889_v31 }
 0x108   :  { %v1045_v38 = vshll.u32 %v4503_v28, %v3705_v18  ;;  %v598_v15 = vsel %vm596_vm5, %v597_v30, %v593_v1  ;;  %v910_v63 = vsel %vm898_vm9, %v892_v24, %v909_v17  ;;  %v3910_v62 = vshll.u32 %v872_v41, 8 }
 0x109   :  { %vm449_vm10 = vcmp.lt.s32.totalorder %v3896_v20, 0  ;;  %v450_v26 = vsub.s32 0, %v3896_v20  ;;  %v599_v8 = vadd.s32 %v598_v15, %v594_v54  ;;  %vm897_vm11 = vcmp.lt.s32.totalorder %v3759_v52, 2 }
 0x10a   :  { %v3917_v55 = vshrl.u32 %v4505_v5, %v3639_v27  ;;  %v3920_v12 = vshrl.u32 %v3695_v4, 5  ;;  %v3924_v0 = vsel %vm897_vm11, %v904_v43, %v906_v44  ;;  %v911_v24 = vsel %vm897_vm11, %v908_v60, %v910_v63 }
 0x10b   :  { %v3928_v50 = vor.u32 %v1046_v57, %v1045_v38  ;;  %v451_v40 = vsel %vm449_vm10, %v450_v26, %v3896_v20  ;;  %v600_v22 = vadd.s32 536870912, %v599_v8  ;;  %v915_v39 = vand.u32 65535, %v911_v24 }
 0x10c   :  { %vm348_vm12 = vcmp.lt.s32.totalorder %v3604_v59, 0  ;;  %v452_v61 = vclz %v451_v40  ;;  %v913_v37 = vand.u32 65535, %v3910_v62  ;;  %v914_v4 = vshrl.u32 %v3910_v62, 16 }
 0x10d   :  { %v916_v46 = vshrl.u32 %v911_v24, 16  ;;  %v440_v42 = vadd.s32 %v3842_v49, %v3840_v56  ;;  %v3936_v7 = vshrl.u32 %v600_v22, 30  ;;  %v880_v36 = vshrl.u32 %v4500_v9, %v3651_v32 }
 0x10e   :  { %v938_v34 = vshrl.u32 %v3924_v0, 16  ;;  %v2423_v3 = vadd.s32 4294967294, %v452_v61  ;;  %v3941_v47 = vadd.s32 %v590_v35, %v571_v6  ;;  %v3943_v1 = vmul.u32 %v915_v39, %v914_v4 }
 0x10f   :  { %v918_v48 = vmul.u32 %v916_v46, %v913_v37  ;;  %v4506_v41 = vand.u32 2147483647, %v3604_v59  ;;  %v470_v56 = vsub.s32 4, %v3879_v2  ;;  %v602_v49 = vshll.u32 %v3936_v7, 30 }
 0x110   :  { %v3955_v32 = vsel %vm896_vm6, %v880_v36, %v883_v14  ;;  %v901_v6 = vsel %vm899_vm4, %v889_v31, 2102212464  ;;  %vm2424_vm14 = vcmp.lt.s32.totalorder %v2423_v3, 0  ;;  %v917_v35 = vmul.u32 %v915_v39, %v913_v37 }
 0x111   :  { %vm3947_vm13 = vcmp.le.f32.partialorder %v4506_v41, 0.7853982  ;;  %v921_v17 = vshll.u32 %v918_v48, 16  ;;  %v937_v45 = vand.u32 65535, %v3924_v0  ;;  %v455_v54 = vsel %vm2424_vm14, 0, %v2423_v3 }
 0x112   :  { %v3960_v5 = vsub.s32 %v599_v8, %v602_v49  ;;  %v920_v57 = vmul.u32 %v916_v46, %v914_v4  ;;  %v3962_v30 = vmul.u32 %v938_v34, %v913_v37  ;;  %v456_v43 = vsub.s32 32, %v455_v54 }
 0x113   :  { %v460_v44 = vsub.s32 4294967266, %v455_v54  ;;  %v923_v60 = vshll.u32 %v3943_v1, 16  ;;  %vm925_vm15 = vc.u32 %v917_v35, %v921_v17  ;;  %v927_v38 = vadd.s32 %v921_v17, %v917_v35 }
 0x114   :  { %vm604_vm0 = vcmp.lt.s32.totalorder %v3960_v5, 0  ;;  %v605_v14 = vsub.s32 0, %v3960_v5  ;;  %v926_v31 = vsel %vm925_vm15, 1, %v4499_v23  ;;  %v457_v15 = vshll.u32 %v3896_v20, %v455_v54 }
 0x115   :  { %v458_v63 = vshrl.u32 %v440_v42, %v456_v43  ;;  %v461_v26 = vadd.s32 127, %v460_v44  ;;  %v928_v8 = vadd.s32 %v926_v31, %v920_v57  ;;  %v471_v0 = vsel %vm348_vm12, %v470_v56, %v3879_v2 }
 0x116   :  { %v606_v24 = vsel %vm604_vm0, %v605_v14, %v3960_v5  ;;  %vm929_vm1 = vc.u32 %v927_v38, %v923_v60  ;;  %v943_v40 = vshll.u32 %v3962_v30, 16  ;;  %vm503_vm2 = vcmp.lt.s32.totalorder %v3571_v10, 0 }
 0x117   :  { %v459_v22 = vor.u32 %v458_v63, %v457_v15  ;;  %v462_v39 = vshll.u32 %v461_v26, 23  ;;  %v607_v61 = vclz %v606_v24  ;;  %v930_v46 = vsel %vm929_vm1, 1, %v4499_v23 }
 0x118   :  { %v922_v20 = vshrl.u32 %v918_v48, 16  ;;  %v932_v42 = vadd.s32 %v930_v46, %v928_v8  ;;  %v939_v36 = vmul.u32 %v937_v45, %v913_v37  ;;  %v941_v3 = vmul.u32 %v937_v45, %v914_v4 }
 0x119   :  { %v463_v41 = vor.u32 4788187, %v462_v39  ;;  %v473_v2 = vsel %vm3947_vm13, 0, %v471_v0  ;;  %v2426_v56 = vadd.s32 4294967294, %v607_v61  ;;  %v924_v49 = vshrl.u32 %v3943_v1, 16 }
 0x11a   :  { %v4509_v35 = vand.u32 2147483647, %v3571_v10  ;;  %v933_v54 = vadd.s32 %v932_v42, %v922_v20  ;;  %v942_v57 = vmul.u32 %v938_v34, %v914_v4  ;;  %vm947_vm7 = vc.u32 %v939_v36, %v943_v40 }
 0x11b   :  { %v949_v48 = vadd.s32 %v943_v40, %v939_v36  ;;  %vm1054_vm8 = vcmp.lt.s32.totalorder %v3920_v12, 4  ;;  %v464_v37 = vand.u32 2147483647, %v463_v41  ;;  %v466_v45 = vcvt.s32.f32 %v459_v22 }
 0x11c   :  { %vm3981_vm3 = vcmp.le.f32.partialorder %v4509_v35, 0.7853982  ;;  %vm2427_vm4 = vcmp.lt.s32.totalorder %v2426_v56, 0  ;;  %v948_v43 = vsel %vm947_vm7, 1, %v4499_v23  ;;  %v625_v1 = vsub.s32 4, %v3936_v7 }
 0x11d   :  { %v610_v44 = vsel %vm2427_vm4, 0, %v2426_v56  ;;  %v945_v60 = vshll.u32 %v941_v3, 16  ;;  %v950_v14 = vadd.s32 %v948_v43, %v942_v57  ;;  %v467_v31 = vmul.f32 %v466_v45, %v464_v37 }
 0x11e   :  { %v611_v38 = vsub.s32 32, %v610_v44  ;;  %v612_v15 = vshll.u32 %v3960_v5, %v610_v44  ;;  %v615_v63 = vsub.s32 4294967266, %v610_v44  ;;  %v490_v4 = vadd.s32 3, %v473_v2 }
 0x11f   :  { %v902_v34 = vsel %vm898_vm9, %v3881_v13, %v901_v6  ;;  %v934_v26 = vadd.s32 %v933_v54, %v924_v49  ;;  %vm951_vm5 = vc.u32 %v949_v48, %v945_v60  ;;  %v468_v8 = vxor.u32 2147483648, %v467_v31 }
 0x120   :  { %v613_v0 = vshrl.u32 %v3941_v47, %v611_v38  ;;  %v616_v24 = vadd.s32 127, %v615_v63  ;;  %v952_v40 = vsel %vm951_vm5, 1, %v4499_v23  ;;  %v626_v22 = vsel %vm503_vm2, %v625_v1, %v3936_v7 }
 0x121   :  { %v944_v5 = vshrl.u32 %v3962_v30, 16  ;;  %v953_v39 = vadd.s32 %v949_v48, %v945_v60  ;;  %v954_v61 = vadd.s32 %v952_v40, %v950_v14  ;;  %v469_v46 = vsel %vm348_vm12, %v468_v8, %v467_v31 }
 0x122   :  { %v614_v13 = vor.u32 %v613_v0, %v612_v15  ;;  %v617_v6 = vshll.u32 %v616_v24, 23  ;;  %v946_v20 = vshrl.u32 %v941_v3, 16  ;;  %v472_v47 = vsel %vm3947_vm13, %v3604_v59, %v469_v46 }
 0x123   :  { %v955_v42 = vadd.s32 %v954_v61, %v944_v5  ;;  %v4003_v36 = vadd.s32 %v953_v39, %v934_v26  ;;  %vm959_vm6 = vc.u32 %v934_v26, %v953_v39  ;;  %v474_v41 = vmul.f32 %v472_v47, %v472_v47 }
 0x124   :  { %v618_v7 = vor.u32 4788187, %v617_v6  ;;  %v621_v2 = vcvt.s32.f32 %v614_v13  ;;  %v628_v30 = vsel %vm3981_vm3, 0, %v626_v22  ;;  %v1060_v56 = vsel %vm1054_vm8, %v3928_v50, 920167782 }
 0x125   :  { %v4512_v3 = vor.u32 %v3741_v53, %v3737_v51  ;;  %v903_v49 = vsel %vm897_vm11, %v3955_v32, %v902_v34  ;;  %v956_v35 = vadd.s32 %v955_v42, %v946_v20  ;;  %v4020_v54 = vor.u32 %v3917_v55, %v3771_v11 }
 0x126   :  { %v475_v57 = vmul.f32 -0.001358992, %v474_v41  ;;  %v482_v48 = vmul.f32 -0.00019511016, %v474_v41  ;;  %v619_v37 = vand.u32 2147483647, %v618_v7  ;;  %v957_v52 = vmul.u32 %v3910_v62, %v903_v49 }
 0x127   :  { %v1064_v19 = vsel %vm1054_vm8, %v4512_v3, 1326507024  ;;  %v4022_v45 = vand.u32 3, %v490_v4  ;;  %v645_v43 = vadd.s32 3, %v628_v30  ;;  %v960_v44 = vadd.s32 1, %v956_v35 }
 0x128   :  { %v1019_v51 = vand.u32 2147483647, %v3602_v58  ;;  %v476_v53 = vadd.f32 0.041655596, %v475_v57  ;;  %v483_v1 = vadd.f32 0.008332121, %v482_v48  ;;  %v622_v60 = vmul.f32 %v621_v2, %v619_v37 }
 0x129   :  { %v961_v32 = vsel %vm959_vm6, %v960_v44, %v956_v35  ;;  %v1037_v11 = vshrl.u32 %v4501_v21, %v3721_v16  ;;  %v1040_v55 = vshrl.u32 %v4502_v33, %v3721_v16  ;;  %v1043_v14 = vshrl.u32 %v4503_v28, %v3721_v16 }
 0x12a   :  { %v477_v31 = vmul.f32 %v476_v53, %v474_v41  ;;  %v484_v38 = vmul.f32 %v483_v1, %v474_v41  ;;  %v623_v15 = vxor.u32 2147483648, %v622_v60  ;;  %v962_v63 = vadd.s32 %v961_v32, %v957_v52 }
 0x12b   :  { %v1026_v4 = vand.u32 8388607, %v1019_v51  ;;  %v1036_v62 = vshll.u32 %v4500_v9, %v3705_v18  ;;  %v1039_v34 = vshll.u32 %v4501_v21, %v3705_v18  ;;  %v1042_v26 = vshll.u32 %v4502_v33, %v3705_v18 }
 0x12c   :  { %v478_v8 = vadd.f32 -0.4999988, %v477_v31  ;;  %v485_v0 = vadd.f32 -0.16666654, %v484_v38  ;;  %v624_v24 = vsel %vm503_vm2, %v623_v15, %v622_v60  ;;  %v963_v40 = vadd.s32 536870912, %v962_v63 }
 0x12d   :  { %vm493_vm9 = vcmp.eq.s32.totalorder %v4022_v45, 0  ;;  %v4047_v22 = vsel %vm3981_vm3, %v3571_v10, %v624_v24  ;;  %v1038_v5 = vor.u32 %v1037_v11, %v1036_v62  ;;  %v1041_v39 = vor.u32 %v1040_v55, %v1039_v34 }
 0x12e   :  { %v1044_v61 = vor.u32 %v1043_v14, %v1042_v26  ;;  %v479_v46 = vmul.f32 %v478_v8, %v474_v41  ;;  %v486_v13 = vmul.f32 %v485_v0, %v474_v41  ;;  %v629_v18 = vmul.f32 %v4047_v22, %v4047_v22 }
 0x12f   :  { %v4051_v6 = vshrl.u32 %v963_v40, 30  ;;  %vm496_vm10 = vcmp.eq.s32.totalorder %v4022_v45, 2  ;;  %v4054_v20 = vand.u32 3, %v645_v43  ;;  %v1027_v42 = vor.u32 8388608, %v1026_v4 }
 0x130   :  { %v1035_v17 = vshrl.u32 %v4500_v9, %v3721_v16  ;;  %v480_v7 = vadd.f32 1.0, %v479_v46  ;;  %v487_v2 = vadd.f32 1.0, %v486_v13  ;;  %vm492_vm11 = vcmp.lt.s32.totalorder %v4022_v45, 2 }
 0x131   :  { %v630_v30 = vmul.f32 -0.001358992, %v629_v18  ;;  %v637_v3 = vmul.f32 -0.00019511016, %v629_v18  ;;  %v965_v41 = vshll.u32 %v4051_v6, 30  ;;  %vm1051_vm12 = vcmp.lt.s32.totalorder %v3920_v12, 1 }
 0x132   :  { %vm1053_vm13 = vcmp.lt.s32.totalorder %v3920_v12, 3  ;;  %v1056_v49 = vsel %vm1054_vm8, %v1044_v61, 2102212464  ;;  %v488_v35 = vmul.f32 %v487_v2, %v472_v47  ;;  %v1059_v16 = vsel %vm1051_vm12, %v1038_v5, %v1041_v39 }
 0x133   :  { %v631_v57 = vadd.f32 0.041655596, %v630_v30  ;;  %v638_v48 = vadd.f32 0.008332121, %v637_v3  ;;  %v4066_v37 = vsub.s32 %v962_v63, %v965_v41  ;;  %v1061_v43 = vsel %vm1053_vm13, %v1044_v61, %v1060_v56 }
 0x134   :  { %v1063_v44 = vsel %vm1051_vm12, %v1041_v39, %v1044_v61  ;;  %v1065_v53 = vsel %vm1053_vm13, %v3928_v50, %v1064_v19  ;;  %vm489_vm14 = vweird.f32 %v3604_v59  ;;  %v494_v47 = vxor.u32 2147483648, %v488_v35 }
 0x135   :  { %v497_v1 = vxor.u32 2147483648, %v480_v7  ;;  %v632_v60 = vmul.f32 %v631_v57, %v629_v18  ;;  %v639_v52 = vmul.f32 %v638_v48, %v629_v18  ;;  %vm648_vm15 = vcmp.eq.s32.totalorder %v4054_v20, 0 }
 0x136   :  { %vm967_vm0 = vcmp.lt.s32.totalorder %v4066_v37, 0  ;;  %v968_v32 = vsub.s32 0, %v4066_v37  ;;  %vm1052_vm1 = vcmp.lt.s32.totalorder %v3920_v12, 2  ;;  %v4080_v56 = vshll.u32 %v1027_v42, 8 }
 0x137   :  { %v495_v11 = vsel %vm493_vm9, %v480_v7, %v494_v47  ;;  %v633_v50 = vadd.f32 -0.4999988, %v632_v60  ;;  %v640_v19 = vadd.f32 -0.16666654, %v639_v52  ;;  %vm647_vm2 = vcmp.lt.s32.totalorder %v4054_v20, 2 }
 0x138   :  { %v1066_v55 = vsel %vm1052_vm1, %v1063_v44, %v1065_v53  ;;  %vm644_vm3 = vweird.f32 %v3571_v10  ;;  %v969_v14 = vsel %vm967_vm0, %v968_v32, %v4066_v37  ;;  %v1055_v31 = vsel %vm1051_vm12, %v1035_v17, %v1038_v5 }
 0x139   :  { %v1057_v38 = vsel %vm1053_vm13, %v1041_v39, %v1056_v49  ;;  %v1062_v15 = vsel %vm1052_vm1, %v1059_v16, %v1061_v43  ;;  %v498_v63 = vsel %vm496_vm10, %v497_v1, %v488_v35  ;;  %v634_v4 = vmul.f32 %v633_v50, %v629_v18 }
 0x13a   :  { %v641_v62 = vmul.f32 %v640_v19, %v629_v18  ;;  %v970_v34 = vclz %v969_v14  ;;  %v499_v26 = vsel %vm492_vm11, %v495_v11, %v498_v63  ;;  %vm651_vm7 = vcmp.eq.s32.totalorder %v4054_v20, 2 }
 0x13b   :  { %v1070_v8 = vand.u32 65535, %v1066_v55  ;;  %v1071_v0 = vshrl.u32 %v1066_v55, 16  ;;  %v635_v24 = vadd.f32 1.0, %v634_v4  ;;  %v1068_v39 = vand.u32 65535, %v4080_v56 }
 0x13c   :  { %v642_v40 = vadd.f32 1.0, %v641_v62  ;;  %v2495_v5 = vadd.s32 4294967294, %v970_v34  ;;  %vm866_vm8 = vcmp.lt.s32.totalorder %v3581_v25, 0  ;;  %v988_v61 = vsub.s32 4, %v4051_v6 }
 0x13d   :  { %v4105_v46 = vsel %vm1052_vm1, %v1055_v31, %v1057_v38  ;;  %v1069_v45 = vshrl.u32 %v4080_v56, 16  ;;  %v1093_v13 = vshrl.u32 %v1062_v15, 16  ;;  %v652_v42 = vxor.u32 2147483648, %v635_v24  ;;  %v4515_v38 = vld [vmem:[#allocation40_spill] sm:$0xff] }
 0x13e   :  { %v643_v18 = vmul.f32 %v642_v40, %v4047_v22  ;;  %vm2496_vm4 = vcmp.lt.s32.totalorder %v2495_v5, 0  ;;  %v1073_v17 = vmul.u32 %v1071_v0, %v1068_v39  ;;  %v500_v7 = vsel %vm489_vm14, nan, %v499_v26 }
 0x13f   :  { %v973_v2 = vsel %vm2496_vm4, 0, %v2495_v5  ;;  %v1074_v30 = vmul.u32 %v1070_v8, %v1069_v45  ;;  %v1092_v3 = vand.u32 65535, %v1062_v15  ;;  %v1072_v35 = vmul.u32 %v1070_v8, %v1068_v39 }
 0x140   :  { %v649_v41 = vxor.u32 2147483648, %v643_v18  ;;  %v653_v12 = vsel %vm651_vm7, %v652_v42, %v643_v18  ;;  %v974_v49 = vsub.s32 32, %v973_v2  ;;  %vm4115_vm5 = vcmp.le.f32.partialorder %v864_v29, 0.7853982 }
 0x141   :  { %v975_v22 = vshll.u32 %v4066_v37, %v973_v2  ;;  %v978_v48 = vsub.s32 4294967266, %v973_v2  ;;  %v1075_v59 = vmul.u32 %v1071_v0, %v1069_v45  ;;  %v1076_v16 = vshll.u32 %v1073_v17, 16 }
 0x142   :  { %v650_v43 = vsel %vm648_vm15, %v635_v24, %v649_v41  ;;  %v976_v44 = vshrl.u32 %v4003_v36, %v974_v49  ;;  %v1078_v53 = vshll.u32 %v1074_v30, 16  ;;  %v1095_v47 = vmul.u32 %v1093_v13, %v1068_v39 }
 0x143   :  { %v654_v1 = vsel %vm647_vm2, %v650_v43, %v653_v12  ;;  %v979_v60 = vadd.s32 127, %v978_v48  ;;  %vm1080_vm6 = vc.u32 %v1072_v35, %v1076_v16  ;;  %v1082_v29 = vadd.s32 %v1076_v16, %v1072_v35  ;;  %v4517_v12 = vld [vmem:[#allocation37_spill] sm:$0xff] }
 0x144   :  { %v655_v52 = vsel %vm644_vm3, nan, %v654_v1  ;;  %v977_v37 = vor.u32 %v976_v44, %v975_v22  ;;  %v1081_v32 = vsel %vm1080_vm6, 1, %v4499_v23  ;;  %v1096_v11 = vmul.u32 %v1092_v3, %v1069_v45 }
 0x145   :  { %v657_v50 = vpack.c.bf16 %v655_v52, %v500_v7  ;;  %v980_v19 = vshll.u32 %v979_v60, 23  ;;  %v1083_v55 = vadd.s32 %v1081_v32, %v1075_v59  ;;  %vm1084_vm9 = vc.u32 %v1082_v29, %v1078_v53  ;;  %v4519_v32 = vld [vmem:[#allocation38_spill] sm:$0xff] }
 0x146   :  { %v989_v36 = vsel %vm866_vm8, %v988_v61, %v4051_v6  ;;  %v1085_v20 = vsel %vm1084_vm9, 1, %v4499_v23  ;;  %v1094_v14 = vmul.u32 %v1092_v3, %v1068_v39  ;;  %v1098_v31 = vshll.u32 %v1095_v47, 16  ;;  %v4516_v39 = vld [vmem:[#allocation36_spill] sm:$0xff] }
 0x147   :  { %vm1209_vm10 = vcmp.lt.s32.totalorder %v4515_v38, 4  ;;  %779 = vmatmul.bf16.vlgmr.msra.gmra.mxu1 %v657_v50  ;;  %v981_v10 = vor.u32 4788187, %v980_v19  ;;  %v1077_v15 = vshrl.u32 %v1073_v17, 16  ;;  %v1079_v63 = vshrl.u32 %v1074_v30, 16 }
 0x148   :  { %v1087_v4 = vadd.s32 %v1085_v20, %v1083_v55  ;;  %v1097_v62 = vmul.u32 %v1093_v13, %v1069_v45  ;;  %v1100_v34 = vshll.u32 %v1096_v11, 16  ;;  %vm1102_vm11 = vc.u32 %v1094_v14, %v1098_v31 }
 0x149   :  { %v1104_v26 = vadd.s32 %v1098_v31, %v1094_v14  ;;  %v982_v8 = vand.u32 2147483647, %v981_v10  ;;  %v984_v0 = vcvt.s32.f32 %v977_v37  ;;  %v1103_v6 = vsel %vm1102_vm11, 1, %v4499_v23 }
 0x14a   :  { %v1088_v24 = vadd.s32 %v1087_v4, %v1077_v15  ;;  %v991_v40 = vsel %vm4115_vm5, 0, %v989_v36  ;;  %v1105_v5 = vadd.s32 %v1103_v6, %v1097_v62  ;;  %v1174_v61 = vand.u32 2147483647, %v4516_v39 }
 0x14b   :  { %vm1106_vm12 = vc.u32 %v1104_v26, %v1100_v34  ;;  %v985_v18 = vmul.f32 %v984_v0, %v982_v8  ;;  %v1108_v45 = vadd.s32 %v1104_v26, %v1100_v34  ;;  %v1099_v13 = vshrl.u32 %v1095_v47, 16 }
 0x14c   :  { %v1089_v42 = vadd.s32 %v1088_v24, %v1079_v63  ;;  %v1107_v17 = vsel %vm1106_vm12, 1, %v4499_v23  ;;  %v1101_v7 = vshrl.u32 %v1096_v11, 16  ;;  %v1181_v30 = vand.u32 8388607, %v1174_v61 }
 0x14d   :  { %v1109_v2 = vadd.s32 %v1107_v17, %v1105_v5  ;;  %v986_v3 = vxor.u32 2147483648, %v985_v18  ;;  %v1191_v49 = vshll.u32 %v4500_v9, %v4517_v12  ;;  %v1192_v48 = vshrl.u32 %v4501_v21, %v3639_v27 }
 0x14e   :  { %v4140_v41 = vadd.s32 %v1108_v45, %v1089_v42  ;;  %vm1114_vm13 = vc.u32 %v1089_v42, %v1108_v45  ;;  %v1182_v22 = vor.u32 8388608, %v1181_v30  ;;  %v1194_v59 = vshll.u32 %v4501_v21, %v4517_v12 }
 0x14f   :  { %v1110_v35 = vadd.s32 %v1109_v2, %v1099_v13  ;;  %v987_v16 = vsel %vm866_vm8, %v986_v3, %v985_v18  ;;  %v1195_v43 = vshrl.u32 %v4502_v33, %v3639_v27  ;;  %v1197_v44 = vshll.u32 %v4502_v33, %v4517_v12 }
 0x150   :  { %v1198_v53 = vshrl.u32 %v4503_v28, %v3639_v27  ;;  %v990_v47 = vsel %vm4115_vm5, %v3581_v25, %v987_v16  ;;  %v1008_v1 = vadd.s32 3, %v991_v40  ;;  %v4159_v29 = vor.u32 %v1192_v48, %v1191_v49  ;;  %v4518_v28 = vld [vmem:[#allocation39_spill] sm:$0xff] }
 0x151   :  { %v1111_v60 = vadd.s32 %v1110_v35, %v1101_v7  ;;  %v992_v21 = vmul.f32 %v990_v47, %v990_v47  ;;  %v4161_v52 = vor.u32 %v1195_v43, %v1194_v59  ;;  %vm1206_vm14 = vcmp.lt.s32.totalorder %v4515_v38, 1 }
 0x152   :  { %v4163_v37 = vor.u32 %v1198_v53, %v1197_v44  ;;  %v1215_v33 = vsel %vm1209_vm10, %v4020_v54, 920167782  ;;  %v4520_v11 = vor.u32 %v4518_v28, %v4519_v32  ;;  %v4174_v19 = vshll.u32 %v1182_v22, 8 }
 0x153   :  { %v1115_v50 = vadd.s32 1, %v1111_v60  ;;  %v993_v55 = vmul.f32 -0.001358992, %v992_v21  ;;  %v1000_v36 = vmul.f32 -0.00019511016, %v992_v21  ;;  %v1112_v20 = vmul.u32 %v4080_v56, %v4105_v46 }
 0x154   :  { %v1219_v57 = vsel %vm1209_vm10, %v4520_v11, 1326507024  ;;  %vm1208_vm15 = vcmp.lt.s32.totalorder %v4515_v38, 3  ;;  %v4179_v14 = vand.u32 3, %v1008_v1  ;;  %vm1207_vm0 = vcmp.lt.s32.totalorder %v4515_v38, 2 }
 0x155   :  { %v1116_v31 = vsel %vm1114_vm13, %v1115_v50, %v1111_v60  ;;  %v1218_v10 = vsel %vm1206_vm14, %v4161_v52, %v4163_v37  ;;  %v994_v15 = vadd.f32 0.041655596, %v993_v55  ;;  %v1001_v63 = vadd.f32 0.008332121, %v1000_v36 }
 0x156   :  { %v1117_v4 = vadd.s32 %v1116_v31, %v1112_v20  ;;  %v1214_v56 = vsel %vm1206_vm14, %v4159_v29, %v4161_v52  ;;  %v1216_v46 = vsel %vm1208_vm15, %v4163_v37, %v1215_v33  ;;  %v1220_v62 = vsel %vm1208_vm15, %v4020_v54, %v1219_v57 }
 0x157   :  { %v1223_v34 = vand.u32 65535, %v4174_v19  ;;  %v1224_v26 = vshrl.u32 %v4174_v19, 16  ;;  %v995_v8 = vmul.f32 %v994_v15, %v992_v21  ;;  %v1002_v0 = vmul.f32 %v1001_v63, %v992_v21 }
 0x158   :  { %v1118_v24 = vadd.s32 536870912, %v1117_v4  ;;  %v1221_v6 = vsel %vm1207_vm0, %v1218_v10, %v1220_v62  ;;  %v1217_v45 = vsel %vm1207_vm0, %v1214_v56, %v1216_v46  ;;  %vm1010_vm1 = vcmp.lt.s32.totalorder %v4179_v14, 2 }
 0x159   :  { %v1225_v40 = vand.u32 65535, %v1221_v6  ;;  %v1226_v5 = vshrl.u32 %v1221_v6, 16  ;;  %v996_v18 = vadd.f32 -0.4999988, %v995_v8  ;;  %v1003_v42 = vadd.f32 -0.16666654, %v1002_v0 }
 0x15a   :  { %v4201_v17 = vshrl.u32 %v1118_v24, 30  ;;  %vm1011_vm2 = vcmp.eq.s32.totalorder %v4179_v14, 0  ;;  %v1248_v35 = vshrl.u32 %v1217_v45, 16  ;;  %vm1014_vm3 = vcmp.eq.s32.totalorder %v4179_v14, 2 }
 0x15b   :  { %v1227_v54 = vmul.u32 %v1225_v40, %v1223_v34  ;;  %v1228_v13 = vmul.u32 %v1226_v5, %v1223_v34  ;;  %v1229_v7 = vmul.u32 %v1225_v40, %v1224_v26  ;;  %v997_v2 = vmul.f32 %v996_v18, %v992_v21 }
 0x15c   :  { %v1004_v30 = vmul.f32 %v1003_v42, %v992_v21  ;;  %v1120_v3 = vshll.u32 %v4201_v17, 30  ;;  %v1230_v16 = vmul.u32 %v1226_v5, %v1224_v26  ;;  %v1247_v44 = vand.u32 65535, %v1217_v45 }
 0x15d   :  { %v1231_v12 = vshll.u32 %v1228_v13, 16  ;;  %v1233_v49 = vshll.u32 %v1229_v7, 16  ;;  %v998_v22 = vadd.f32 1.0, %v997_v2  ;;  %v1232_v21 = vshrl.u32 %v1228_v13, 16 }
 0x15e   :  { %v1005_v48 = vadd.f32 1.0, %v1004_v30  ;;  %v1121_v59 = vsub.s32 %v1117_v4, %v1120_v3  ;;  %v1250_v28 = vmul.u32 %v1248_v35, %v1223_v34  ;;  %v1249_v20 = vmul.u32 %v1247_v44, %v1223_v34 }
 0x15f   :  { %vm1235_vm7 = vc.u32 %v1227_v54, %v1231_v12  ;;  %v1237_v43 = vadd.s32 %v1231_v12, %v1227_v54  ;;  %v1015_v1 = vxor.u32 2147483648, %v998_v22  ;;  %v1251_v31 = vmul.u32 %v1247_v44, %v1224_v26 }
 0x160   :  { %v1006_v53 = vmul.f32 %v1005_v48, %v990_v47  ;;  %vm1122_vm8 = vcmp.lt.s32.totalorder %v1121_v59, 0  ;;  %v1123_v60 = vsub.s32 0, %v1121_v59  ;;  %v1236_v33 = vsel %vm1235_vm7, 1, %v4499_v23 }
 0x161   :  { %vm1239_vm4 = vc.u32 %v1237_v43, %v1233_v49  ;;  %v1238_v50 = vadd.s32 %v1236_v33, %v1230_v16  ;;  %v1234_v10 = vshrl.u32 %v1229_v7, 16  ;;  %v1253_v63 = vshll.u32 %v1250_v28, 16 }
 0x162   :  { %v1012_v32 = vxor.u32 2147483648, %v1006_v53  ;;  %v1016_v11 = vsel %vm1014_vm3, %v1015_v1, %v1006_v53  ;;  %v1124_v57 = vsel %vm1122_vm8, %v1123_v60, %v1121_v59  ;;  %v1240_v36 = vsel %vm1239_vm4, 1, %v4499_v23 }
 0x163   :  { %v1125_v55 = vclz %v1124_v57  ;;  %v1242_v15 = vadd.s32 %v1240_v36, %v1238_v50  ;;  %v1252_v46 = vmul.u32 %v1248_v35, %v1224_v26  ;;  %v1255_v8 = vshll.u32 %v1251_v31, 16 }
 0x164   :  { %v1013_v47 = vsel %vm1011_vm2, %v998_v22, %v1012_v32  ;;  %vm1257_vm6 = vc.u32 %v1249_v20, %v1253_v63  ;;  %v1259_v6 = vadd.s32 %v1253_v63, %v1249_v20  ;;  %v1190_v18 = vshrl.u32 %v4500_v9, %v3639_v27  ;;  %v806_v22 = vld [vmem:[#allocation3 + $0x10] sm:$0xff] }
 0x165   :  { %v4215_v4 = vsel %vm1010_vm1, %v1013_v47, %v1016_v11  ;;  %v2498_v56 = vadd.s32 4294967294, %v1125_v55  ;;  %v1243_v62 = vadd.s32 %v1242_v15, %v1232_v21  ;;  %v1258_v34 = vsel %vm1257_vm6, 1, %v4499_v23 }
 0x166   :  { %v1260_v42 = vadd.s32 %v1258_v34, %v1252_v46  ;;  %v1211_v14 = vsel %vm1209_vm10, %v4163_v37, 2102212464  ;;  %v1254_v26 = vshrl.u32 %v1250_v28, 16  ;;  %vm1261_vm9 = vc.u32 %v1259_v6, %v1255_v8 }
 0x167   :  { %vm2499_vm5 = vcmp.lt.s32.totalorder %v2498_v56, 0  ;;  %v1244_v24 = vadd.s32 %v1243_v62, %v1234_v10  ;;  %v1263_v45 = vadd.s32 %v1259_v6, %v1255_v8  ;;  %v1262_v2 = vsel %vm1261_vm9, 1, %v4499_v23  ;;  %v1470_v23 = vld [vmem:[%s4493_s0 + $0x8] sm:$0xf] }
 0x168   :  { %v1128_v0 = vsel %vm2499_vm5, 0, %v2498_v56  ;;  %v1256_v30 = vshrl.u32 %v1251_v31, 16  ;;  %v1264_v3 = vadd.s32 %v1262_v2, %v1260_v42  ;;  %v1210_v37 = vsel %vm1206_vm14, %v1190_v18, %v4159_v29 }
 0x169   :  { %v1129_v40 = vsub.s32 32, %v1128_v0  ;;  %v1133_v5 = vsub.s32 4294967266, %v1128_v0  ;;  %v1130_v54 = vshll.u32 %v1121_v59, %v1128_v0  ;;  %v4225_v12 = vadd.s32 %v1263_v45, %v1244_v24 }
 0x16a   :  { %vm1269_vm11 = vc.u32 %v1244_v24, %v1263_v45  ;;  %v1212_v49 = vsel %vm1208_vm15, %v4161_v52, %v1211_v14  ;;  %v1265_v35 = vadd.s32 %v1264_v3, %v1254_v26  ;;  %v1331_v44 = vpack.c.bf16 %v806_v22, %v806_v22 }
 0x16b   :  { %v1131_v13 = vshrl.u32 %v4140_v41, %v1129_v40  ;;  %v1134_v7 = vadd.s32 127, %v1133_v5  ;;  %v1213_v48 = vsel %vm1207_vm0, %v1210_v37, %v1212_v49  ;;  %v1477_v53 = vunpack.c.l.b16 %v1470_v23 }
 0x16c   :  { %v1266_v59 = vadd.s32 %v1265_v35, %v1256_v30  ;;  %1445 = vmatmul.bf16.gmra.mxu2 %v1331_v44  ;;  %v1267_v52 = vmul.u32 %v4174_v19, %v1213_v48  ;;  %vm1021_vm10 = vcmp.lt.s32.totalorder %v3602_v58, 0  ;;  %v1143_v38 = vsub.s32 4, %v4201_v17 }
 0x16d   :  { %v1132_v27 = vor.u32 %v1131_v13, %v1130_v54  ;;  %v1135_v9 = vshll.u32 %v1134_v7, 23  ;;  %v4238_v60 = vpack.c.b16 %v1477_v53, %v1477_v53  ;;  %vm4247_vm12 = vcmp.le.f32.partialorder %v1019_v51, 0.7853982 }
 0x16e   :  { %v1270_v29 = vadd.s32 1, %v1266_v59  ;;  %v1144_v36 = vsel %vm1021_vm10, %v1143_v38, %v4201_v17  ;;  %vm1007_vm1 = vweird.f32 %v3581_v25  ;;  %vm1162_vm3 = vweird.f32 %v3602_v58 }
 0x16f   :  { %v1136_v41 = vor.u32 4788187, %v1135_v9  ;;  %v1139_v43 = vcvt.s32.f32 %v1132_v27  ;;  %1510 = vxpose.xlu2.c.b16.end [2/2] (short) (narrow) %v4238_v60, 16  ;;  %v1146_v51 = vsel %vm4247_vm12, 0, %v1144_v36  ;;  %v1018_v22 = vsel %vm1007_vm1, nan, %v4215_v4 }
 0x170   :  { %v1271_v21 = vsel %vm1269_vm11, %v1270_v29, %v1266_v59  ;;  %v1163_v8 = vadd.s32 3, %v1146_v51  ;;  %vm1176_vm7 = vcmp.lt.s32.totalorder %v4516_v39, 0  ;;  %v2847_v29 = vld [vmem:[#allocation15 + $0x68] sm:$0xff]  ;;  %vm1175_vm8 = vcmp.le.f32.partialorder %v1174_v61, 0.7853982 }
 0x171   :  { %v1137_v16 = vand.u32 2147483647, %v1136_v41  ;;  %v1272_v28 = vadd.s32 %v1271_v21, %v1267_v52  ;;  %vm1317_vm9 = vweird.f32 %v4516_v39 }
 0x172   :  { %v1164_v5 = vand.u32 3, %v1163_v8  ;;  %v2845_v8 = vld [vmem:[#allocation15 + $0x58] sm:$0xff] }
 0x173   :  { %v1140_v1 = vmul.f32 %v1139_v43, %v1137_v16  ;;  %v1273_v57 = vadd.s32 536870912, %v1272_v28  ;;  %v2849_v16 = vld [vmem:[#allocation15 + $0x78] sm:$0xff] }
 0x174   :  { %vm1169_vm15 = vcmp.eq.s32.totalorder %v1164_v5, 2  ;;  %vm1166_vm0 = vcmp.eq.s32.totalorder %v1164_v5, 0  ;;  %vm1165_vm2 = vcmp.lt.s32.totalorder %v1164_v5, 2  ;;  %1700 = vmatpush.bf16.msrb.mxu3 %v2849_v16  ;;  %v785_v5 = vlaneseq }
 0x175   :  { %v1141_v33 = vxor.u32 2147483648, %v1140_v1  ;;  %v4254_v55 = vshrl.u32 %v1273_v57, 30 }
 0x177   :  { %v1142_v11 = vsel %vm1021_vm10, %v1141_v33, %v1140_v1  ;;  %v1275_v47 = vshll.u32 %v4254_v55, 30 }
 0x178   :  { %v1145_v19 = vsel %vm4247_vm12, %v3602_v58, %v1142_v11  ;;  %v1298_v58 = vsub.s32 4, %v4254_v55  ;;  %vm1480_vm12 = vcmask 130048  }
 0x179   :  { %v1147_v50 = vmul.f32 %v1145_v19, %v1145_v19  ;;  %v1276_v63 = vsub.s32 %v1272_v28, %v1275_v47 }
 0x17a   :  { %v1299_v21 = vsel %vm1176_vm7, %v1298_v58, %v4254_v55 }
 0x17b   :  { %v1148_v20 = vmul.f32 -0.001358992, %v1147_v50  ;;  %v1155_v31 = vmul.f32 -0.00019511016, %v1147_v50  ;;  %vm1277_vm13 = vcmp.lt.s32.totalorder %v1276_v63, 0  ;;  %v1278_v62 = vsub.s32 0, %v1276_v63 }
 0x17c   :  { %v1301_v38 = vsel %vm1175_vm8, 0, %v1299_v21 }
 0x17d   :  { %v1149_v10 = vadd.f32 0.041655596, %v1148_v20  ;;  %v1156_v15 = vadd.f32 0.008332121, %v1155_v31  ;;  %v1279_v34 = vsel %vm1277_vm13, %v1278_v62, %v1276_v63  ;;  %vm1529_vm13 = vcmask 1043456  }
 0x17e   :  { %v1280_v6 = vclz %v1279_v34 }
 0x17f   :  { %v1150_v56 = vmul.f32 %v1149_v10, %v1147_v50  ;;  %v1157_v46 = vmul.f32 %v1156_v15, %v1147_v50 }
 0x180   :  { %v2501_v18 = vadd.s32 4294967294, %v1280_v6  ;;  %v1441_v6 = vpop.f32.mrf.mxu2 }
 0x181   :  { %v1151_v0 = vadd.f32 -0.4999988, %v1150_v56  ;;  %v1158_v24 = vadd.f32 -0.16666654, %v1157_v46  ;;  %v2846_v46 = vld [vmem:[#allocation15 + $0x60] sm:$0xff] }
 0x182   :  { %vm2502_vm14 = vcmp.lt.s32.totalorder %v2501_v18, 0 }
 0x183   :  { %v1152_v17 = vmul.f32 %v1151_v0, %v1147_v50  ;;  %v1159_v40 = vmul.f32 %v1158_v24, %v1147_v50  ;;  %v1283_v54 = vsel %vm2502_vm14, 0, %v2501_v18  ;;  %v1318_v50 = vadd.s32 3, %v1301_v38 }
 0x184   :  { %v1284_v13 = vsub.s32 32, %v1283_v54  ;;  %v1288_v7 = vsub.s32 4294967266, %v1283_v54  ;;  %v1285_v3 = vshll.u32 %v1276_v63, %v1283_v54  ;;  %vm1525_vm14 = vcmask 195584  }
 0x185   :  { %v1153_v42 = vadd.f32 1.0, %v1152_v17  ;;  %v1160_v14 = vadd.f32 1.0, %v1159_v40  ;;  %v1319_v61 = vand.u32 3, %v1318_v50  ;;  %v766_v17 = vpop.f32.mrf.mxu0 }
 0x186   :  { %v1286_v27 = vshrl.u32 %v4225_v12, %v1284_v13  ;;  %v1289_v9 = vadd.s32 127, %v1288_v7  ;;  %v2848_v12 = vld [vmem:[#allocation15 + $0x70] sm:$0xff]  ;;  %v2926_v13 = vld [vmem:[#allocation11] ss:$0 sm:$0xff] }
 0x187   :  { %v1161_v26 = vmul.f32 %v1160_v14, %v1145_v19  ;;  %v1170_v45 = vxor.u32 2147483648, %v1153_v42  ;;  %1701 = vmatpush.bf16.msrb.mxu3 %v2848_v12  ;;  %vm1324_vm4 = vcmp.eq.s32.totalorder %v1319_v61, 2  ;;  %vm1321_vm5 = vcmp.eq.s32.totalorder %v1319_v61, 0  ;;  %v4280_v12 = vld [vmem:[%s4493_s0] sm:$0xff] }
 0x188   :  { %v1287_v35 = vor.u32 %v1286_v27, %v1285_v3  ;;  %v1290_v41 = vshll.u32 %v1289_v9, 23  ;;  %vm1320_vm6 = vcmp.lt.s32.totalorder %v1319_v61, 2  ;;  %v1443_v18 = vpop.f32.mrf.mxu2  ;;  %v789_v14 = vstv %s4523_s19  ;;  %v2863_v61 = vld [vmem:[#allocation17 + $0x68] sm:$0xff] }
 0x189   :  { %v1167_v2 = vxor.u32 2147483648, %v1161_v26  ;;  %v1171_v30 = vsel %vm1169_vm15, %v1170_v45, %v1161_v26  ;;  %v3359_v3 = vmov 0.0  }
 0x18a   :  { %v1291_v59 = vor.u32 4788187, %v1290_v41  ;;  %v1294_v44 = vcvt.s32.f32 %v1287_v35 }
 0x18b   :  { %v1168_v37 = vsel %vm1166_vm0, %v1153_v42, %v1167_v2  ;;  %1702 = vmatpush.bf16.msrb.mxu3 %v2847_v29  ;;  %v786_v42 = vshrl.u32 %v785_v5, 7  ;;  %v2853_v5 = vld [vmem:[#allocation17 + $0x18] sm:$0xff] }
 0x18c   :  { %v1172_v49 = vsel %vm1165_vm2, %v1168_v37, %v1171_v30  ;;  %v1292_v43 = vand.u32 2147483647, %v1291_v59  ;;  %v2844_v30 = vld [vmem:[#allocation15 + $0x50] sm:$0xff] }
 0x18d   :  { %v1173_v23 = vsel %vm1162_vm3, nan, %v1172_v49  ;;  %v768_v26 = vpop.f32.mrf.mxu0  ;;  %vm790_vm11 = vcmp.lt.s32.totalorder %v786_v42, %v789_v14  ;;  %v787_v2 = vadd.s32 8, %v786_v42  ;;  %v2843_v49 = vld [vmem:[#allocation15 + $0x48] sm:$0xff] }
 0x18e   :  { %v1330_v48 = vpack.c.bf16 %v1173_v23, %v1018_v22  ;;  %v1295_v53 = vmul.f32 %v1294_v44, %v1292_v43  ;;  %v2492_v27 = vsel %vm790_vm11, 1.0, %v3359_v3  ;;  %v2842_v43 = vld [vmem:[#allocation15 + $0x40] sm:$0xff] }
 0x18f   :  { %1703 = vmatpush.bf16.msrb.mxu3 %v2846_v46  ;;  %vm791_vm10 = vcmp.lt.s32.totalorder %v787_v2, %v789_v14  ;;  %v800_v22 = vmul.f32 %v2926_v13, %v2492_v27  ;;  %v2859_v46 = vld [vmem:[#allocation17 + $0x48] sm:$0xff]  ;;  %v2852_v14 = vld [vmem:[#allocation17 + $0x10] sm:$0xff] }
 0x190   :  { %1458 = vmatmul.bf16.vlgmr.msra.gmra.mxu3 %v1330_v48  ;;  %v1296_v25 = vxor.u32 2147483648, %v1295_v53  ;;  %v2493_v35 = vsel %vm791_vm10, 1.0, %v3359_v3 }
 0x191   :  { %v801_v23 = vmul.f32 %v2926_v13, %v2493_v35  ;;  %v2850_v13 = vld [vmem:[#allocation17] sm:$0xff] }
 0x192   :  { %v1297_v4 = vsel %vm1176_vm7, %v1296_v25, %v1295_v53  ;;  %v2924_v25 = vld [vmem:[#allocation9] ss:$0 sm:$0xff] }
 0x193   :  { %v1300_v1 = vsel %vm1175_vm8, %v4516_v39, %v1297_v4  ;;  %1704 = vmatpush.bf16.msrb.mxu3 %v2845_v8  ;;  %v2925_v39 = vld [vmem:[%s4524_s4] ss:$0 sm:$0xff]  ;;  %v1442_v58 = vadd.f32 %v2924_v25, %v1441_v6  ;;  %v1444_v29 = vadd.f32 %v2924_v25, %v1443_v18  ;;  %v2836_v8 = vld [vmem:[#allocation15 + $0x10] sm:$0xff] }
 0x194   :  { %v1302_v52 = vmul.f32 %v1300_v1, %v1300_v1  ;;  %v769_v45 = vadd.f32 %v2925_v39, %v768_v26  ;;  %v767_v54 = vadd.f32 %v2925_v39, %v766_v17  ;;  %v2834_v17 = vld [vmem:[#allocation15] sm:$0xff] }
 0x196   :  { %v1303_v33 = vmul.f32 -0.001358992, %v1302_v52  ;;  %v1310_v28 = vmul.f32 -0.00019511016, %v1302_v52 }
 0x197   :  { %1705 = vmatpush.bf16.msrb.mxu3 %v2844_v30 }
 0x198   :  { %v1304_v32 = vadd.f32 0.041655596, %v1303_v33  ;;  %v1311_v11 = vadd.f32 0.008332121, %v1310_v28 }
 0x19a   :  { %v1305_v57 = vmul.f32 %v1304_v32, %v1302_v52  ;;  %v1312_v19 = vmul.f32 %v1311_v11, %v1302_v52 }
 0x19b   :  { %1706 = vmatpush.bf16.msrb.mxu3 %v2843_v49  ;;  %v2927_v49 = vld [vmem:[%s4442_s14] ss:$0 sm:$0xff] }
 0x19c   :  { %v1306_v36 = vadd.f32 -0.4999988, %v1305_v57  ;;  %v1313_v20 = vadd.f32 -0.16666654, %v1312_v19  ;;  %v2865_v57 = vld [vmem:[#allocation17 + $0x78] sm:$0xff] }
 0x19e   :  { %v1307_v31 = vmul.f32 %v1306_v36, %v1302_v52  ;;  %v1314_v47 = vmul.f32 %v1313_v20, %v1302_v52  ;;  %v2841_v36 = vld [vmem:[#allocation15 + $0x38] sm:$0xff]  ;;  %v2864_v20 = vld [vmem:[#allocation17 + $0x70] sm:$0xff] }
 0x19f   :  { %1707 = vmatpush.bf16.msrb.mxu3 %v2842_v43  ;;  %1682 = vmatpush.bf16.msrb.mxu2 %v2841_v36 }
 0x1a0   :  { %v1308_v51 = vadd.f32 1.0, %v1307_v31  ;;  %v1315_v10 = vadd.f32 1.0, %v1314_v47  ;;  %v2857_v31 = vld [vmem:[#allocation17 + $0x38] sm:$0xff]  ;;  %v2840_v47 = vld [vmem:[#allocation15 + $0x30] sm:$0xff] }
 0x1a2   :  { %v1316_v15 = vmul.f32 %v1315_v10, %v1300_v1  ;;  %v1325_v63 = vxor.u32 2147483648, %v1308_v51  ;;  %v2862_v10 = vld [vmem:[#allocation17 + $0x60] sm:$0xff] }
 0x1a3   :  { %1683 = vmatpush.bf16.msrb.mxu2 %v2840_v47 }
 0x1a4   :  { %v1322_v55 = vxor.u32 2147483648, %v1316_v15  ;;  %v1326_v56 = vsel %vm1324_vm4, %v1325_v63, %v1316_v15  ;;  %v2838_v15 = vld [vmem:[#allocation15 + $0x20] sm:$0xff]  ;;  %v2861_v63 = vld [vmem:[#allocation17 + $0x58] sm:$0xff] }
 0x1a6   :  { %v1323_v62 = vsel %vm1321_vm5, %v1308_v51, %v1322_v55  ;;  %v2839_v51 = vld [vmem:[#allocation15 + $0x28] sm:$0xff]  ;;  %v2837_v55 = vld [vmem:[#allocation15 + $0x18] sm:$0xff] }
 0x1a7   :  { %v1327_v0 = vsel %vm1320_vm6, %v1323_v62, %v1326_v56  ;;  %1684 = vmatpush.bf16.msrb.mxu2 %v2839_v51  ;;  %v2860_v56 = vld [vmem:[#allocation17 + $0x50] sm:$0xff]  ;;  %v2858_v62 = vld [vmem:[#allocation17 + $0x40] sm:$0xff] }
 0x1a8   :  { %v1328_v24 = vsel %vm1317_vm9, nan, %v1327_v0  ;;  %v2856_v0 = vld [vmem:[#allocation17 + $0x30] sm:$0xff] }
 0x1a9   :  { %v1332_v34 = vpack.c.bf16 %v1328_v24, %v1328_v24  ;;  %v2835_v24 = vld [vmem:[#allocation15 + $0x8] sm:$0xff] }
 0x1ab   :  { %1463 = vmatmul.bf16.gmra.mxu3 %v1332_v34  ;;  %1685 = vmatpush.bf16.msrb.mxu2 %v2838_v15  ;;  %v2855_v34 = vld [vmem:[#allocation17 + $0x28] sm:$0xff] }
 0x1af   :  { %1686 = vmatpush.bf16.msrb.mxu2 %v2837_v55 }
 0x1b3   :  { %1687 = vmatpush.bf16.msrb.mxu2 %v2836_v8 }
 0x1b7   :  { %1688 = vmatpush.bf16.msrb.mxu2 %v2835_v24 }
 0x1bb   :  { %1689 = vmatpush.bf16.msrb.mxu2 %v2834_v17 }
 0x1c4   :  { %v780_v40 = vpop.f32.mrf.mxu1 }
 0x1c5   :  { %v781_v41 = vadd.f32 %v780_v40, %v767_v54  ;;  %v2854_v40 = vld [vmem:[#allocation17 + $0x20] sm:$0xff] }
 0x1c7   :  { %v802_v59 = vadd.f32 %v800_v22, %v781_v41 }
 0x1cc   :  { %v782_v7 = vpop.f32.mrf.mxu1 }
 0x1cd   :  { %v783_v9 = vadd.f32 %v782_v7, %v769_v45  ;;  %v2851_v45 = vld [vmem:[#allocation17 + $0x8] sm:$0xff] }
 0x1cf   :  { %v803_v48 = vadd.f32 %v801_v23, %v783_v9 }
 0x1d1   :  { %v1471_v16 = vpack.c.bf16 %v803_v48, %v802_v59 }
 0x1d3   :  { %1494 = vmatpush.bf16.msrb.mxu0 %v1471_v16 }
 0x1d6   :  { %2571 = vmatmul.msk.bf16.vlgmr.msrb.gmra.mxu0 %vm1480_vm12, %v4280_v12 }
 0x1d7   :  { %1850 = vmatpush.bf16.msra.mxu0 %v2857_v31 }
 0x1db   :  { %1851 = vmatpush.bf16.msra.mxu0 %v2856_v0 }
 0x1df   :  { %1852 = vmatpush.bf16.msra.mxu0 %v2855_v34  ;;  %v2881_v34 = vld [vmem:[#allocation15 + $0xf8] sm:$0xff] }
 0x1e0   :  { %2199 = vmatpush.bf16.msra.mxu3 %v2881_v34 }
 0x1e3   :  { %1853 = vmatpush.bf16.msra.mxu0 %v2854_v40 }
 0x1e6   :  { %2572 = vmatmul.msk.bf16.gmra.mxu0 %vm1480_vm12, %v4238_v60 }
 0x1e7   :  { %1854 = vmatpush.bf16.msra.mxu0 %v2853_v5 }
 0x1eb   :  { %1855 = vmatpush.bf16.msra.mxu0 %v2852_v14 }
 0x1ef   :  { %v1446_v37 = vpop.f32.mrf.mxu2  ;;  %1856 = vmatpush.bf16.msra.mxu0 %v2851_v45 }
 0x1f0   :  { %v1447_v33 = vadd.f32 %v2924_v25, %v1446_v37 }
 0x1f3   :  { %1857 = vmatpush.bf16.msra.mxu0 %v2850_v13 }
 0x1f7   :  { %v1448_v44 = vpop.f32.mrf.mxu2 }
 0x200   :  { %v1517_v50 = vpop.trf.xlu2 }
 0x213   :  { %v1459_v53 = vpop.f32.mrf.mxu3 }
 0x214   :  { %v1460_v1 = vadd.f32 %v1459_v53, %v1442_v58 }
 0x21b   :  { %v1461_v4 = vpop.f32.mrf.mxu3 }
 0x21c   :  { %v1462_v52 = vadd.f32 %v1461_v4, %v1444_v29 }
 0x21e   :  { %v1505_v21 = vpack.c.bf16 %v1462_v52, %v1460_v1 }
 0x220   :  { %1708 = vmatmul.bf16.vlgmr.msrb.gmra.mxu3 %v1505_v21 }
 0x22e   :  { %v1464_v28 = vpop.f32.mrf.mxu3 }
 0x22f   :  { %v1465_v38 = vadd.f32 %v1464_v28, %v1447_v33 }
 0x231   :  { %v1506_v32 = vpack.c.bf16 %v1465_v38, %v1465_v38 }
 0x233   :  { %v1531_v11 = vsel %vm1529_vm13, %v1506_v32, 0  ;;  %1713 = vmatmul.bf16.gmra.mxu3 %v1506_v32 }
 0x234   :  { %1539 = vmatpush.bf16.msrb.mxu1 %v1531_v11 }
 0x236   :  { %v1466_v19 = vpop.f32.mrf.mxu3 }
 0x238   :  { %1540 = vmatpush.bf16.msrb.mxu1 %v1505_v21 }
 0x23b   :  { %2573 = vmatmul.msk.bf16.vlgmr.msrb.gmra.mxu1 %vm1525_vm14, %v1517_v50 }
 0x23c   :  { %1864 = vmatpush.bf16.msra.mxu1 %v2865_v57 }
 0x240   :  { %1865 = vmatpush.bf16.msra.mxu1 %v2864_v20 }
 0x244   :  { %1866 = vmatpush.bf16.msra.mxu1 %v2863_v61 }
 0x248   :  { %1867 = vmatpush.bf16.msra.mxu1 %v2862_v10 }
 0x24c   :  { %1868 = vmatpush.bf16.msra.mxu1 %v2861_v63 }
 0x250   :  { %1869 = vmatpush.bf16.msra.mxu1 %v2860_v56 }
 0x253   :  { %v1496_v6 = vpop.f32.mrf.mxu0 }
 0x254   :  { %1870 = vmatpush.bf16.msra.mxu1 %v2859_v46 }
 0x258   :  { %1871 = vmatpush.bf16.msra.mxu1 %v2858_v62 }
 0x25b   :  { %1872 = vmatmul.bf16.vlgmr.msra.gmra.mxu1 %v1471_v16  ;;  %v1498_v18 = vpop.f32.mrf.mxu0  ;;  %v2928_v16 = vld [vmem:[#allocation18] ss:$0 sm:$0xff] }
 0x25c   :  { %v1547_v42 = vpack.c.bf16 %v1498_v18, %v1496_v6 }
 0x25e   :  { %1690 = vmatmul.bf16.vlgmr.msrb.gmra.mxu2 %v1547_v42 }
 0x263   :  { %v1501_v26 = vpop.f32.mrf.mxu0 }
 0x264   :  { %v1548_v39 = vpack.c.bf16 %v1501_v26, %v1501_v26 }
 0x26b   :  { %v1503_v54 = vpop.f32.mrf.mxu0 }
 0x26e   :  { %1695 = vmatmul.bf16.gmra.mxu2 %v1548_v39  ;;  %v2880_v39 = vld [vmem:[#allocation15 + $0xf0] sm:$0xff] }
 0x26f   :  { %2200 = vmatpush.bf16.msra.mxu3 %v2880_v39 }
 0x2a3   :  { %v1709_v7 = vpop.f32.mrf.mxu3 }
 0x2ab   :  { %v1711_v2 = vpop.f32.mrf.mxu3 }
 0x2b6   :  { %v1714_v30 = vpop.f32.mrf.mxu3 }
 0x2b8   :  { %v1542_v3 = vpop.f32.mrf.mxu1 }
 0x2be   :  { %v1716_v27 = vpop.f32.mrf.mxu3 }
 0x2c0   :  { %v1544_v9 = vpop.f32.mrf.mxu1 }
 0x2c1   :  { %v1549_v37 = vpack.c.bf16 %v1544_v9, %v1542_v3 }
 0x2c3   :  { %1858 = vmatmul.bf16.vlgmr.msra.gmra.mxu0 %v1549_v37 }
 0x2d8   :  { %v1873_v43 = vpop.f32.mrf.mxu1 }
 0x2e0   :  { %v1875_v4 = vpop.f32.mrf.mxu1 }
 0x2e1   :  { %v1691_v35 = vpop.f32.mrf.mxu2 }
 0x2e2   :  { %v1692_v41 = vadd.f32 %v2927_v49, %v1691_v35  ;;  %v2878_v35 = vld [vmem:[#allocation15 + $0xe0] sm:$0xff] }
 0x2e4   :  { %v4289_v22 = vadd.f32 %v1709_v7, %v1692_v41 }
 0x2e6   :  { %1880 = vadd.xlane.f32.xlu2 %v4289_v22  ;;  %v1886_v32 = vmul.f32 %v4289_v22, %v4289_v22 }
 0x2e9   :  { %v1693_v23 = vpop.f32.mrf.mxu2 }
 0x2ea   :  { %v1694_v21 = vadd.f32 %v2927_v49, %v1693_v23 }
 0x2ec   :  { %v4300_v33 = vadd.f32 %v1711_v2, %v1694_v21  ;;  %v2879_v2 = vld [vmem:[#allocation15 + $0xe8] sm:$0xff] }
 0x2ed   :  { %2201 = vmatpush.bf16.msra.mxu3 %v2879_v2 }
 0x2ee   :  { %v1887_v11 = vmul.f32 %v4300_v33, %v4300_v33 }
 0x2f1   :  { %v1696_v48 = vpop.f32.mrf.mxu2  ;;  %2202 = vmatpush.bf16.msra.mxu3 %v2878_v35  ;;  %v2932_v35 = vld [vmem:[#allocation24] ss:$0 sm:$0xff] }
 0x2f2   :  { %v1697_v38 = vadd.f32 %v2927_v49, %v1696_v48 }
 0x2f4   :  { %v4309_v57 = vadd.f32 %v1714_v30, %v1697_v38 }
 0x2f6   :  { %v1888_v19 = vmul.f32 %v4309_v57, %v4309_v57 }
 0x2f9   :  { %v1698_v59 = vpop.f32.mrf.mxu2 }
 0x340   :  { %v1859_v44 = vpop.f32.mrf.mxu0 }
 0x341   :  { %v1860_v53 = vadd.f32 %v2928_v16, %v1859_v44 }
 0x343   :  { %v4292_v25 = vadd.f32 %v1873_v43, %v1860_v53 }
 0x345   :  { %1966 = vadd.xlane.f32.xlu0 %v4292_v25  ;;  %v1970_v52 = vmul.f32 %v4292_v25, %v4292_v25 }
 0x348   :  { %v1861_v58 = vpop.f32.mrf.mxu0 }
 0x349   :  { %v1862_v29 = vadd.f32 %v2928_v16, %v1861_v58 }
 0x34b   :  { %v4295_v1 = vadd.f32 %v1875_v4, %v1862_v29  ;;  %v2877_v4 = vld [vmem:[#allocation15 + $0xd8] sm:$0xff] }
 0x34c   :  { %2203 = vmatpush.bf16.msra.mxu3 %v2877_v4 }
 0x34d   :  { %1968 = vadd.xlane.f32.xlu1 %v4295_v1  ;;  %1972 = vadd.xlane.f32.xlu0 %v1970_v52  ;;  %v1971_v28 = vmul.f32 %v4295_v1, %v4295_v1 }
 0x355   :  { %1974 = vadd.xlane.f32.xlu1 %v1971_v28  ;;  %1882 = vadd.xlane.f32.xlu0 %v4300_v33 }
 0x359   :  { %v1881_v46 = vpop.xlane.xlu2 %1880 }
 0x35a   :  { %v4322_v24 = vmul.f32 0.0078125, %v1881_v46 }
 0x35c   :  { %v1901_v18 = vmul.f32 %v4322_v24, %v4322_v24  ;;  %v1910_v39 = vsub.f32 %v4289_v22, %v4322_v24 }
 0x35d   :  { %1889 = vadd.xlane.f32.xlu1 %v1886_v32  ;;  %1891 = vadd.xlane.f32.xlu0 %v1887_v11 }
 0x365   :  { %1884 = vadd.xlane.f32.xlu1 %v4309_v57  ;;  %1893 = vadd.xlane.f32.xlu0 %v1888_v19  ;;  %v2929_v19 = vld [vmem:[#allocation20] ss:$0 sm:$0xff] }
 0x3b8   :  { %v1967_v50 = vpop.xlane.xlu0 %1966 }
 0x3b9   :  { %v4314_v36 = vmul.f32 0.0078125, %v1967_v50 }
 0x3bb   :  { %v1980_v47 = vmul.f32 %v4314_v36, %v4314_v36  ;;  %v1986_v52 = vsub.f32 %v4292_v25, %v4314_v36 }
 0x3c0   :  { %v1969_v20 = vpop.xlane.xlu1 %1968  ;;  %v1973_v31 = vpop.xlane.xlu0 %1972 }
 0x3c1   :  { %v1978_v61 = vmul.f32 0.0078125, %v1973_v31  ;;  %v4318_v10 = vmul.f32 0.0078125, %v1969_v20  ;;  %v2876_v20 = vld [vmem:[#allocation15 + $0xd0] sm:$0xff] }
 0x3c2   :  { %2204 = vmatpush.bf16.msra.mxu3 %v2876_v20 }
 0x3c3   :  { %v1982_v51 = vsub.f32 %v1978_v61, %v1980_v47  ;;  %v1981_v62 = vmul.f32 %v4318_v10, %v4318_v10  ;;  %v1987_v25 = vsub.f32 %v4295_v1, %v4318_v10  ;;  %v2874_v10 = vld [vmem:[#allocation15 + $0xc0] sm:$0xff] }
 0x3c5   :  { %v1984_v15 = vmax.f32 %v1982_v51, 0.0 }
 0x3c7   :  { %v1988_v63 = vadd.f32 1e-05, %v1984_v15 }
 0x3c8   :  { %v1975_v55 = vpop.xlane.xlu1 %1974  ;;  %v1883_v56 = vpop.xlane.xlu0 %1882 }
 0x3c9   :  { %2937 = vrsqrt.f32 %v1988_v63  ;;  %v1979_v8 = vmul.f32 0.0078125, %v1975_v55  ;;  %v4324_v17 = vmul.f32 0.0078125, %v1883_v56  ;;  %vm1996_vm0 = vweird.f32 %v1988_v63  ;;  %v2930_v56 = vld [vmem:[#allocation21] ss:$0 sm:$0xff] }
 0x3cb   :  { %v1983_v0 = vsub.f32 %v1979_v8, %v1981_v62  ;;  %v1902_v45 = vmul.f32 %v4324_v17, %v4324_v17  ;;  %v2875_v8 = vld [vmem:[#allocation15 + $0xc8] sm:$0xff] }
 0x3cc   :  { %2205 = vmatpush.bf16.msra.mxu3 %v2875_v8 }
 0x3cd   :  { %v1985_v6 = vmax.f32 %v1983_v0, 0.0 }
 0x3cf   :  { %v2938_v40 = vpop.eup %2937  ;;  %v1989_v5 = vadd.f32 1e-05, %v1985_v6 }
 0x3d0   :  { %v1991_v42 = vmul.f32 %v2938_v40, %v1988_v63  ;;  %v1890_v14 = vpop.xlane.xlu1 %1889  ;;  %v1892_v26 = vpop.xlane.xlu0 %1891  ;;  %vm1997_vm15 = vweird.f32 %v2938_v40  ;;  %2206 = vmatpush.bf16.msra.mxu3 %v2874_v10 }
 0x3d1   :  { %2939 = vrsqrt.f32 %v1989_v5  ;;  %v1898_v54 = vmul.f32 0.0078125, %v1890_v14  ;;  %v1899_v13 = vmul.f32 0.0078125, %v1892_v26  ;;  %vm1998_vm1 = vmor %vm1996_vm0, %vm1997_vm15  ;;  %vm2006_vm3 = vweird.f32 %v1989_v5 }
 0x3d2   :  { %v1992_v7 = vmul.f32 %v2938_v40, %v1991_v42  ;;  %v2873_v42 = vld [vmem:[#allocation15 + $0xb8] sm:$0xff] }
 0x3d3   :  { %v1904_v30 = vsub.f32 %v1898_v54, %v1901_v18  ;;  %v1905_v3 = vsub.f32 %v1899_v13, %v1902_v45  ;;  %2181 = vmatpush.bf16.msra.mxu2 %v2873_v42  ;;  %v2872_v54 = vld [vmem:[#allocation15 + $0xb0] sm:$0xff] }
 0x3d4   :  { %v1993_v27 = vmul.f32 0.5, %v1992_v7 }
 0x3d5   :  { %v1907_v9 = vmax.f32 %v1904_v30, 0.0  ;;  %v1908_v37 = vmax.f32 %v1905_v3, 0.0  ;;  %v2931_v3 = vld [vmem:[#allocation23] ss:$0 sm:$0xff] }
 0x3d6   :  { %v1994_v49 = vsub.f32 1.5, %v1993_v27  ;;  %v1911_v27 = vsub.f32 %v4300_v33, %v4324_v17 }
 0x3d7   :  { %v2940_v41 = vpop.eup %2939  ;;  %v4330_v23 = vadd.f32 1e-05, %v1907_v9  ;;  %v4332_v48 = vadd.f32 1e-05, %v1908_v37  ;;  %2182 = vmatpush.bf16.msra.mxu2 %v2872_v54 }
 0x3d8   :  { %v1995_v59 = vmul.f32 %v2938_v40, %v1994_v49  ;;  %v2001_v16 = vmul.f32 %v2940_v41, %v1989_v5  ;;  %v1885_v43 = vpop.xlane.xlu1 %1884  ;;  %v1894_v44 = vpop.xlane.xlu0 %1893  ;;  %vm2007_vm2 = vweird.f32 %v2940_v41 }
 0x3d9   :  { %2941 = vrsqrt.f32 %v4330_v23  ;;  %v4335_v53 = vmul.f32 0.0078125, %v1885_v43  ;;  %v1900_v28 = vmul.f32 0.0078125, %v1894_v44  ;;  %vm2008_vm7 = vmor %vm2006_vm3, %vm2007_vm2  ;;  %vm1922_vm5 = vweird.f32 %v4330_v23 }
 0x3da   :  { %v1999_v58 = vsel %vm1998_vm1, %v2938_v40, %v1995_v59  ;;  %v2002_v29 = vmul.f32 %v2940_v41, %v2001_v16  ;;  %2943 = vrsqrt.f32 %v4332_v48  ;;  %vm1932_vm9 = vweird.f32 %v4332_v48 }
 0x3db   :  { %v1903_v21 = vmul.f32 %v4335_v53, %v4335_v53  ;;  %v2010_v32 = vmul.f32 %v1999_v58, %v1986_v52  ;;  %v2870_v58 = vld [vmem:[#allocation15 + $0xa0] sm:$0xff] }
 0x3dc   :  { %v2003_v38 = vmul.f32 0.5, %v2002_v29 }
 0x3dd   :  { %v1906_v11 = vsub.f32 %v1900_v28, %v1903_v21  ;;  %v2015_v55 = vmul.f32 %v2929_v19, %v2010_v32  ;;  %v1912_v21 = vsub.f32 %v4309_v57, %v4335_v53  ;;  %v2869_v32 = vld [vmem:[#allocation15 + $0x98] sm:$0xff]  ;;  %v2866_v57 = vld [vmem:[#allocation15 + $0x80] sm:$0xff] }
 0x3de   :  { %v2004_v50 = vsub.f32 1.5, %v2003_v38 }
 0x3df   :  { %v2942_v31 = vpop.eup %2941  ;;  %v1909_v47 = vmax.f32 %v1906_v11, 0.0  ;;  %v2020_v18 = vadd.f32 %v2930_v56, %v2015_v55 }
 0x3e0   :  { %v2944_v61 = vpop.eup %2943  ;;  %v2005_v51 = vmul.f32 %v2940_v41, %v2004_v50  ;;  %v1917_v15 = vmul.f32 %v2942_v31, %v4330_v23  ;;  %vm1923_vm8 = vweird.f32 %v2942_v31 }
 0x3e1   :  { %v1927_v36 = vmul.f32 %v2944_v61, %v4332_v48  ;;  %v4346_v63 = vadd.f32 1e-05, %v1909_v47  ;;  %vm1933_vm4 = vweird.f32 %v2944_v61  ;;  %vm1924_vm6 = vmor %vm1922_vm5, %vm1923_vm8  ;;  %v2022_v2 = vmax.f32 %v2020_v18, 0.0  ;;  %v2871_v48 = vld [vmem:[#allocation15 + $0xa8] sm:$0xff] }
 0x3e2   :  { %v2009_v46 = vsel %vm2008_vm7, %v2940_v41, %v2005_v51  ;;  %v1918_v62 = vmul.f32 %v2942_v31, %v1917_v15  ;;  %vm1934_vm11 = vmor %vm1932_vm9, %vm1933_vm4  ;;  %2183 = vmatpush.bf16.msra.mxu2 %v2871_v48  ;;  %v2867_v47 = vld [vmem:[#allocation15 + $0x88] sm:$0xff] }
 0x3e3   :  { %v2011_v0 = vmul.f32 %v2009_v46, %v1987_v25  ;;  %v1928_v34 = vmul.f32 %v2944_v61, %v1927_v36  ;;  %2945 = vrsqrt.f32 %v4346_v63  ;;  %vm1942_vm13 = vweird.f32 %v4346_v63  ;;  %v2933_v46 = vld [vmem:[%s4442_s14 + $0x1] ss:$0 sm:$0xff] }
 0x3e4   :  { %v1919_v6 = vmul.f32 0.5, %v1918_v62 }
 0x3e5   :  { %v1929_v40 = vmul.f32 0.5, %v1928_v34  ;;  %v2016_v5 = vmul.f32 %v2929_v19, %v2011_v0 }
 0x3e6   :  { %v1920_v1 = vsub.f32 1.5, %v1919_v6  ;;  %2184 = vmatpush.bf16.msra.mxu2 %v2870_v58 }
 0x3e7   :  { %v1930_v14 = vsub.f32 1.5, %v1929_v40  ;;  %v2021_v26 = vadd.f32 %v2930_v56, %v2016_v5 }
 0x3e8   :  { %v1921_v45 = vmul.f32 %v2942_v31, %v1920_v1 }
 0x3e9   :  { %v2946_v13 = vpop.eup %2945  ;;  %v1931_v7 = vmul.f32 %v2944_v61, %v1930_v14  ;;  %v2023_v30 = vmax.f32 %v2021_v26, 0.0 }
 0x3ea   :  { %v1925_v9 = vsel %vm1924_vm6, %v2942_v31, %v1921_v45  ;;  %v1937_v22 = vmul.f32 %v2946_v13, %v4346_v63  ;;  %vm1943_vm10 = vweird.f32 %v2946_v13  ;;  %2185 = vmatpush.bf16.msra.mxu2 %v2869_v32  ;;  %v2868_v31 = vld [vmem:[#allocation15 + $0x90] sm:$0xff] }
 0x3eb   :  { %v1946_v24 = vmul.f32 %v1925_v9, %v1910_v39  ;;  %v1935_v37 = vsel %vm1934_vm11, %v2944_v61, %v1931_v7  ;;  %v2024_v49 = vpack.c.bf16 %v2023_v30, %v2022_v2  ;;  %vm1944_vm14 = vmor %vm1942_vm13, %vm1943_vm10 }
 0x3ec   :  { %v1947_v41 = vmul.f32 %v1935_v37, %v1911_v27  ;;  %v1938_v23 = vmul.f32 %v2946_v13, %v1937_v22  ;;  %v2888_v22 = vld [vmem:[%s4449_s21 + $0x30] sm:$0xff] }
 0x3ed   :  { %2032 = vmatpush.bf16.msrb.mxu0 %v2024_v49  ;;  %v1952_v59 = vmul.f32 %v2931_v3, %v1946_v24 }
 0x3ee   :  { %v1939_v16 = vmul.f32 0.5, %v1938_v23  ;;  %v1953_v43 = vmul.f32 %v2931_v3, %v1947_v41  ;;  %2186 = vmatpush.bf16.msra.mxu2 %v2868_v31  ;;  %v2887_v41 = vld [vmem:[%s4449_s21 + $0x28] sm:$0xff] }
 0x3ef   :  { %v1958_v44 = vadd.f32 %v2932_v35, %v1952_v59 }
 0x3f0   :  { %v1940_v33 = vsub.f32 1.5, %v1939_v16  ;;  %2702 = vmatmul.msk.bf16.vlgmr.msrb.gmra.mxu0 %vm1480_vm12, %v4280_v12  ;;  %v1959_v17 = vadd.f32 %v2932_v35, %v1953_v43  ;;  %v2886_v43 = vld [vmem:[%s4449_s21 + $0x20] sm:$0xff] }
 0x3f1   :  { %v1961_v29 = vmax.f32 %v1958_v44, 0.0 }
 0x3f2   :  { %v1962_v4 = vmax.f32 %v1959_v17, 0.0  ;;  %v1941_v52 = vmul.f32 %v2946_v13, %v1940_v33  ;;  %2187 = vmatpush.bf16.msra.mxu2 %v2867_v47  ;;  %v2883_v47 = vld [vmem:[%s4449_s21 + $0x8] sm:$0xff] }
 0x3f4   :  { %v2044_v28 = vpack.c.bf16 %v1962_v4, %v1961_v29  ;;  %v1945_v38 = vsel %vm1944_vm14, %v2946_v13, %v1941_v52  ;;  %v2885_v52 = vld [vmem:[%s4449_s21 + $0x18] sm:$0xff] }
 0x3f5   :  { %v1948_v11 = vmul.f32 %v1945_v38, %v1912_v21 }
 0x3f6   :  { %2207 = vmatmul.bf16.vlgmr.msra.gmra.mxu3 %v2044_v28  ;;  %2188 = vmatpush.bf16.msra.mxu2 %v2866_v57 }
 0x3f7   :  { %v1954_v19 = vmul.f32 %v2931_v3, %v1948_v11  ;;  %v2889_v3 = vld [vmem:[%s4449_s21 + $0x38] sm:$0xff]  ;;  %v2884_v11 = vld [vmem:[%s4449_s21 + $0x10] sm:$0xff] }
 0x3f8   :  { %2375 = vmatpush.bf16.msrb.mxu1 %v2889_v3 }
 0x3f9   :  { %v1960_v12 = vadd.f32 %v2932_v35, %v1954_v19 }
 0x3fb   :  { %v1963_v50 = vmax.f32 %v1960_v12, 0.0 }
 0x3fc   :  { %2376 = vmatpush.bf16.msrb.mxu1 %v2888_v22 }
 0x3fd   :  { %v2046_v20 = vpack.c.bf16 %v1963_v50, %v1963_v50 }
 0x400   :  { %2703 = vmatmul.msk.bf16.gmra.mxu0 %vm1480_vm12, %v4238_v60  ;;  %2377 = vmatpush.bf16.msrb.mxu1 %v2887_v41 }
 0x404   :  { %2378 = vmatpush.bf16.msrb.mxu1 %v2886_v43 }
 0x406   :  { %2212 = vmatmul.bf16.gmra.mxu3 %v2046_v20 }
 0x408   :  { %2379 = vmatpush.bf16.msrb.mxu1 %v2885_v52 }
 0x40c   :  { %2380 = vmatpush.bf16.msrb.mxu1 %v2884_v11 }
 0x410   :  { %2381 = vmatpush.bf16.msrb.mxu1 %v2883_v47 }
 0x46d   :  { %v2034_v53 = vpop.f32.mrf.mxu0 }
 0x475   :  { %v2036_v61 = vpop.f32.mrf.mxu0 }
 0x476   :  { %v2043_v51 = vpack.c.bf16 %v2036_v61, %v2034_v53 }
 0x478   :  { %2189 = vmatmul.bf16.vlgmr.msra.gmra.mxu2 %v2043_v51 }
 0x479   :  { %v2208_v15 = vpop.f32.mrf.mxu3 }
 0x47d   :  { %v2039_v25 = vpop.f32.mrf.mxu0 }
 0x47e   :  { %v2045_v63 = vpack.c.bf16 %v2039_v25, %v2039_v25  ;;  %v2882_v25 = vld [vmem:[%s4449_s21] sm:$0xff] }
 0x47f   :  { %2382 = vmatpush.bf16.msrb.mxu1 %v2882_v25 }
 0x481   :  { %v2210_v36 = vpop.f32.mrf.mxu3 }
 0x485   :  { %v2041_v55 = vpop.f32.mrf.mxu0 }
 0x488   :  { %2194 = vmatmul.bf16.gmra.mxu2 %v2045_v63 }
 0x489   :  { %v2213_v56 = vpop.f32.mrf.mxu3 }
 0x491   :  { %v2215_v60 = vpop.f32.mrf.mxu3 }
 0x4fb   :  { %v2190_v62 = vpop.f32.mrf.mxu2 }
 0x4fc   :  { %v2191_v8 = vadd.f32 %v2933_v46, %v2190_v62 }
 0x4fe   :  { %v4367_v0 = vadd.f32 %v2208_v15, %v2191_v8  ;;  %v2935_v8 = vld [vmem:[#allocation24 + $0x1] ss:$0 sm:$0xff] }
 0x500   :  { %2221 = vadd.xlane.f32.xlu1 %v4367_v0  ;;  %v2227_v5 = vmul.f32 %v4367_v0, %v4367_v0 }
 0x503   :  { %v2192_v34 = vpop.f32.mrf.mxu2 }
 0x504   :  { %v2193_v6 = vadd.f32 %v2933_v46, %v2192_v34 }
 0x506   :  { %v4370_v40 = vadd.f32 %v2210_v36, %v2193_v6  ;;  %v2934_v36 = vld [vmem:[#allocation23 + $0x1] ss:$0 sm:$0xff] }
 0x508   :  { %2223 = vadd.xlane.f32.xlu0 %v4370_v40  ;;  %2230 = vadd.xlane.f32.xlu1 %v2227_v5  ;;  %v2228_v42 = vmul.f32 %v4370_v40, %v4370_v40 }
 0x50b   :  { %v2195_v18 = vpop.f32.mrf.mxu2 }
 0x50c   :  { %v2196_v1 = vadd.f32 %v2933_v46, %v2195_v18 }
 0x50e   :  { %v4375_v10 = vadd.f32 %v2213_v56, %v2196_v1 }
 0x510   :  { %2232 = vadd.xlane.f32.xlu0 %v2228_v42  ;;  %2225 = vadd.xlane.f32.xlu1 %v4375_v10  ;;  %v2229_v26 = vmul.f32 %v4375_v10, %v4375_v10 }
 0x513   :  { %v2197_v14 = vpop.f32.mrf.mxu2 }
 0x518   :  { %2234 = vadd.xlane.f32.xlu0 %v2229_v26 }
 0x573   :  { %v2222_v39 = vpop.xlane.xlu1 %2221 }
 0x574   :  { %v2236_v45 = vmul.f32 0.0078125, %v2222_v39 }
 0x576   :  { %v2242_v7 = vmul.f32 %v2236_v45, %v2236_v45  ;;  %v2251_v61 = vsub.f32 %v4367_v0, %v2236_v45 }
 0x57b   :  { %v2231_v54 = vpop.xlane.xlu1 %2230  ;;  %v2224_v13 = vpop.xlane.xlu0 %2223 }
 0x57c   :  { %v2239_v2 = vmul.f32 0.0078125, %v2231_v54  ;;  %v4385_v9 = vmul.f32 0.0078125, %v2224_v13 }
 0x57e   :  { %v2245_v30 = vsub.f32 %v2239_v2, %v2242_v7  ;;  %v2243_v49 = vmul.f32 %v4385_v9, %v4385_v9  ;;  %v2252_v46 = vsub.f32 %v4370_v40, %v4385_v9  ;;  %v2936_v9 = vld [vmem:[%s4450_s22] ss:$0 sm:$0xff] }
 0x580   :  { %v2248_v27 = vmax.f32 %v2245_v30, 0.0 }
 0x582   :  { %v2254_v24 = vadd.f32 1e-05, %v2248_v27 }
 0x583   :  { %v2233_v37 = vpop.xlane.xlu0 %2232  ;;  %v2226_v23 = vpop.xlane.xlu1 %2225 }
 0x584   :  { %2947 = vrsqrt.f32 %v2254_v24  ;;  %v2240_v35 = vmul.f32 0.0078125, %v2233_v37  ;;  %v4395_v59 = vmul.f32 0.0078125, %v2226_v23  ;;  %vm2263_vm15 = vweird.f32 %v2254_v24 }
 0x586   :  { %v2246_v48 = vsub.f32 %v2240_v35, %v2243_v49  ;;  %v2244_v29 = vmul.f32 %v4395_v59, %v4395_v59  ;;  %v2253_v39 = vsub.f32 %v4375_v10, %v4395_v59 }
 0x588   :  { %v2249_v16 = vmax.f32 %v2246_v48, 0.0 }
 0x58a   :  { %v2948_v44 = vpop.eup %2947  ;;  %v2255_v33 = vadd.f32 1e-05, %v2249_v16 }
 0x58b   :  { %v2258_v17 = vmul.f32 %v2948_v44, %v2254_v24  ;;  %v2235_v58 = vpop.xlane.xlu0 %2234  ;;  %vm2264_vm12 = vweird.f32 %v2948_v44 }
 0x58c   :  { %2949 = vrsqrt.f32 %v2255_v33  ;;  %v2241_v4 = vmul.f32 0.0078125, %v2235_v58  ;;  %vm2265_vm0 = vmor %vm2263_vm15, %vm2264_vm12  ;;  %vm2273_vm2 = vweird.f32 %v2255_v33 }
 0x58d   :  { %v2259_v21 = vmul.f32 %v2948_v44, %v2258_v17 }
 0x58e   :  { %v2247_v28 = vsub.f32 %v2241_v4, %v2244_v29 }
 0x58f   :  { %v2260_v38 = vmul.f32 0.5, %v2259_v21 }
 0x590   :  { %v2250_v32 = vmax.f32 %v2247_v28, 0.0 }
 0x591   :  { %v2261_v19 = vsub.f32 1.5, %v2260_v38 }
 0x592   :  { %v2950_v12 = vpop.eup %2949  ;;  %v2256_v50 = vadd.f32 1e-05, %v2250_v32 }
 0x593   :  { %v2262_v20 = vmul.f32 %v2948_v44, %v2261_v19  ;;  %v2268_v31 = vmul.f32 %v2950_v12, %v2255_v33  ;;  %vm2274_vm1 = vweird.f32 %v2950_v12 }
 0x594   :  { %2951 = vrsqrt.f32 %v2256_v50  ;;  %vm2275_vm3 = vmor %vm2273_vm2, %vm2274_vm1  ;;  %vm2283_vm8 = vweird.f32 %v2256_v50 }
 0x595   :  { %v2266_v57 = vsel %vm2265_vm0, %v2948_v44, %v2262_v20  ;;  %v2269_v53 = vmul.f32 %v2950_v12, %v2268_v31 }
 0x596   :  { %v2287_v15 = vmul.f32 %v2266_v57, %v2251_v61 }
 0x597   :  { %v2270_v51 = vmul.f32 0.5, %v2269_v53 }
 0x598   :  { %v2293_v62 = vmul.f32 %v2934_v36, %v2287_v15 }
 0x599   :  { %v2271_v63 = vsub.f32 1.5, %v2270_v51 }
 0x59a   :  { %v2952_v55 = vpop.eup %2951  ;;  %v2299_v1 = vadd.f32 %v2935_v8, %v2293_v62 }
 0x59b   :  { %v2272_v56 = vmul.f32 %v2950_v12, %v2271_v63  ;;  %v2278_v60 = vmul.f32 %v2952_v55, %v2256_v50  ;;  %vm2284_vm7 = vweird.f32 %v2952_v55 }
 0x59c   :  { %vm2285_vm4 = vmor %vm2283_vm8, %vm2284_vm7  ;;  %v2302_v40 = vmax.f32 %v2299_v1, 0.0 }
 0x59d   :  { %v2276_v0 = vsel %vm2275_vm3, %v2950_v12, %v2272_v56  ;;  %v2279_v34 = vmul.f32 %v2952_v55, %v2278_v60 }
 0x59e   :  { %v2288_v6 = vmul.f32 %v2276_v0, %v2252_v46 }
 0x59f   :  { %v2280_v5 = vmul.f32 0.5, %v2279_v34 }
 0x5a0   :  { %v2294_v18 = vmul.f32 %v2934_v36, %v2288_v6 }
 0x5a1   :  { %v2281_v42 = vsub.f32 1.5, %v2280_v5 }
 0x5a2   :  { %v2300_v14 = vadd.f32 %v2935_v8, %v2294_v18 }
 0x5a3   :  { %v2282_v26 = vmul.f32 %v2952_v55, %v2281_v42 }
 0x5a4   :  { %v2303_v45 = vmax.f32 %v2300_v14, 0.0 }
 0x5a5   :  { %v2286_v54 = vsel %vm2285_vm4, %v2952_v55, %v2282_v26 }
 0x5a6   :  { %v2305_v13 = vpack.c.bf16 %v2303_v45, %v2302_v40  ;;  %v2289_v7 = vmul.f32 %v2286_v54, %v2253_v39 }
 0x5a8   :  { %2383 = vmatmul.bf16.vlgmr.msrb.gmra.mxu1 %v2305_v13  ;;  %v2295_v2 = vmul.f32 %v2934_v36, %v2289_v7 }
 0x5aa   :  { %v2301_v30 = vadd.f32 %v2935_v8, %v2295_v2 }
 0x5ac   :  { %v2304_v3 = vmax.f32 %v2301_v30, 0.0 }
 0x5ae   :  { %v2306_v27 = vpack.c.bf16 %v2304_v3, %v2304_v3 }
 0x5b8   :  { %2388 = vmatmul.bf16.gmra.mxu1 %v2306_v27 }
 0x625   :  { %v2384_v22 = vpop.f32.mrf.mxu1 }
 0x626   :  { %v2385_v24 = vadd.f32 %v2936_v9, %v2384_v22 }
 0x628   :  { %2393 = vst [vmem:[#allocation26] sm:$0xff] %v2385_v24 }
 0x62d   :  { %v2386_v10 = vpop.f32.mrf.mxu1 }
 0x62e   :  { %v2387_v37 = vadd.f32 %v2936_v9, %v2386_v10 }
 0x630   :  { %2394 = vst [vmem:[#allocation26 + $0x8] sm:$0xff] %v2387_v37 }
 0x635   :  { %v2389_v49 = vpop.f32.mrf.mxu1 }
 0x636   :  { %v2390_v35 = vadd.f32 %v2936_v9, %v2389_v49 }
 0x638   :  { %2395 = vst [vmem:[#allocation26 + $0x10] sm:$0xff] %v2390_v35 }
 0x639   :  { %2408 = dma.vmem_to_hbm [thread:$0]  %s2401_s11, 384, %s2403_s1, [#allocation5], %s3343_s6, %s3343_s6, %s3344_s29  }
 0x63d   :  { %v2391_v41 = vpop.f32.mrf.mxu1 }
 0x63e   :  { %3330 = dma.done.wait [#allocation5], 384  }
 0x63f   :  { %3331 = vsyncadd [#allocation5], 4294966912 }
 0x640   :  { %2413 = vsyncpa [#allocation4], 1 }
 0x641   :  { %2414 = vsyncpa [#allocation7], 1 }
 0x642   :  { %2415 = vsyncpa [#allocation10], 1 }
 0x643   :  { %2416 = vsyncpa [#allocation13], 1 }
 0x644   :  { %2417 = vsyncpa [#allocation16], 1 }
 0x645   :  { %2418 = vsyncpa [#allocation19], 1 }
 0x646   :  { %2419 = vsyncpa [#allocation22], 1 }
 0x647   :  { %2420 = vsyncpa [#allocation25], 1 }
 0x648   :  { %2421 = vsyncpa [#allocation5], 1 }

</bundles_post_ra>
